<compile_context>
chip_gen: v7x
topology: tpu7x:2x2x1
jax: 0.10.0
libtpu: 0.0.40
codegen_flags: <defaults>
</compile_context>

<pallas_src>
import functools
import math

import jax
import jax.numpy as jnp
import numpy as np
from jax import lax
from jax.experimental import pallas as pl
from jax.experimental.pallas import tpu as pltpu


# -----------------------------------------------------------------------------
# helpers usable both inside kernels and in the pure-JAX reference
# -----------------------------------------------------------------------------
def _erf(x):
    # Abramowitz & Stegun 7.1.26, |err| < 1.5e-7 — far below bf16 resolution.
    a1, a2, a3, a4, a5 = (0.254829592, -0.284496736, 1.421413741,
                          -1.453152027, 1.061405429)
    pc = 0.3275911
    s = jnp.where(x >= 0.0, 1.0, -1.0)
    z = jnp.abs(x)
    t = 1.0 / (1.0 + pc * z)
    poly = ((((a5 * t + a4) * t + a3) * t + a2) * t + a1) * t
    return s * (1.0 - poly * jnp.exp(-z * z))


def _gelu_exact(x_f32):
    return 0.5 * x_f32 * (1.0 + _erf(x_f32 * (1.0 / math.sqrt(2.0))))


def _layer_norm_f32(x_f32, gamma_f32, beta_f32, eps=1e-5):
    mean = jnp.mean(x_f32, axis=-1, keepdims=True)
    var = jnp.mean((x_f32 - mean) ** 2, axis=-1, keepdims=True)
    return (x_f32 - mean) * lax.rsqrt(var + eps) * gamma_f32 + beta_f32


def _pick_tile(total, target, align):
    """Largest tile <= target that divides `total` and is `align`-aligned,
    falling back to `total` (full extent) when nothing smaller fits."""
    t = min(target, total)
    if t >= total:
        return total
    t = (t // align) * align
    while t >= align:
        if total % t == 0:
            return t
        t -= align
    return total


# -----------------------------------------------------------------------------
# stage 1: LN1 + fused QKV(+rotate_half) projection + rotary combine
# -----------------------------------------------------------------------------
def _ln_qkv_rope_kernel(x_ref, cos_ref, sin_ref, ln_g_ref, ln_b_ref,
                        w_ref, b_ref, q_ref, k_ref, v_ref,
                        *, embed_dim, scaling):
    f32, bf16 = jnp.float32, jnp.bfloat16
    E = embed_dim

    x = x_ref[...].astype(f32)                                   # (tt, E)
    h = _layer_norm_f32(x, ln_g_ref[...].astype(f32),
                        ln_b_ref[...].astype(f32)).astype(bf16)

    # one MXU pass: columns = [q | k | v | rotate_half(q) | rotate_half(k)]
    acc = jnp.dot(h, w_ref[...], preferred_element_type=f32)
    acc = acc + b_ref[...].astype(f32)                           # (tt, 5E)

    cos = cos_ref[...]                                           # (tt, E) f32
    sin = sin_ref[...]
    q = acc[:, 0 * E:1 * E]
    k = acc[:, 1 * E:2 * E]
    v = acc[:, 2 * E:3 * E]
    qr = acc[:, 3 * E:4 * E]
    kr = acc[:, 4 * E:5 * E]

    q_ref[...] = ((q * cos + qr * sin) * scaling).astype(bf16)
    k_ref[...] = (k * cos + kr * sin).astype(bf16)
    v_ref[...] = v.astype(bf16)


# -----------------------------------------------------------------------------
# stage 2: flash attention (online softmax, varlen segment masking)
# -----------------------------------------------------------------------------
def _flash_attn_kernel(qmin_ref, qmax_ref,                 # scalar-prefetch SMEM
                       starts_ref, ends_ref, q_ref, kT_ref, v_ref,
                       o_ref,
                       m_scr, l_scr, acc_scr, *, kv_tile):
    f32, bf16 = jnp.float32, jnp.bfloat16
    qi = pl.program_id(1)
    ki = pl.program_id(2)
    nk = pl.num_programs(2)

    @pl.when(ki == 0)
    def _init():
        m_scr[...] = jnp.full(m_scr.shape, -jnp.inf, f32)
        l_scr[...] = jnp.zeros(l_scr.shape, f32)
        acc_scr[...] = jnp.zeros(acc_scr.shape, f32)

    k_begin = ki * kv_tile
    # skip KV tiles whose key range cannot overlap any query segment in this
    # q tile (whole MXU pass saved for packed batches with many sequences)
    overlap = jnp.logical_and(k_begin < qmax_ref[qi],
                              k_begin + kv_tile > qmin_ref[qi])

    @pl.when(overlap)
    def _update():
        q = q_ref[...]                                   # (tq, D) bf16 (roped)
        kt = kT_ref[...]                                 # (D, tk) bf16
        s = jnp.dot(q, kt, preferred_element_type=f32)   # (tq, tk)

        kidx = k_begin + lax.broadcasted_iota(jnp.int32, s.shape, 1)
        valid = jnp.logical_and(kidx >= starts_ref[...], kidx < ends_ref[...])
        s = jnp.where(valid, s, -1e30)

        m_prev = m_scr[...]
        m_new = jnp.maximum(m_prev, jnp.max(s, axis=-1, keepdims=True))
        alpha = jnp.exp(m_prev - m_new)
        p = jnp.exp(s - m_new)
        l_scr[...] = alpha * l_scr[...] + jnp.sum(p, axis=-1, keepdims=True)
        acc_scr[...] = alpha * acc_scr[...] + jnp.dot(
            p.astype(bf16), v_ref[...], preferred_element_type=f32)
        m_scr[...] = m_new

    @pl.when(ki == nk - 1)
    def _finalize():
        inv_l = pl.reciprocal(l_scr[...], approx=True)
        o_ref[...] = (acc_scr[...] * inv_l).astype(o_ref.dtype)


# -----------------------------------------------------------------------------
# stage 3: output projection (all heads at once) + residual + LN2 + GELU MLP
# -----------------------------------------------------------------------------
def _out_proj_mlp_kernel(x_ref, ctx_ref, wo_ref, bo_ref, ln_g_ref, ln_b_ref,
                         w1_ref, b1_ref, w2_ref, b2_ref, o_ref):
    f32, bf16 = jnp.float32, jnp.bfloat16

    attn = jnp.dot(ctx_ref[...], wo_ref[...], preferred_element_type=f32)
    attn = attn + bo_ref[...].astype(f32)
    x1 = x_ref[...] + attn.astype(bf16)                   # first residual

    h2 = _layer_norm_f32(x1.astype(f32), ln_g_ref[...].astype(f32),
                         ln_b_ref[...].astype(f32)).astype(bf16)
    f1 = jnp.dot(h2, w1_ref[...], preferred_element_type=f32)
    f1 = f1 + b1_ref[...].astype(f32)
    g = _gelu_exact(f1).astype(bf16)
    f2 = jnp.dot(g, w2_ref[...], preferred_element_type=f32)
    f2 = f2 + b2_ref[...].astype(f32)

    o_ref[...] = x1 + f2.astype(bf16)                     # second residual


# -----------------------------------------------------------------------------
# wrapper: glue (segments, rotary tables, packed weights) + three pallas_calls
# -----------------------------------------------------------------------------
def flash_transformer_layer(x, cu_lens, max_len, params, num_heads,
                            *, tok_tile=256, q_tile=256, kv_tile=512):
    del max_len  # only used by the CUDA flash-attn kernel for scheduling
    T, E = x.shape
    H = num_heads
    D = E // H
    half = D // 2
    F = params["w1_t"].shape[1]
    scaling = D ** (-0.5)
    bf16 = jnp.bfloat16

    # ---- segment ids / per-token key ranges / rotary tables (plain JAX) ----
    tok = jnp.arange(T, dtype=jnp.int32)
    seg = jnp.sum(tok[:, None] >= cu_lens[None, 1:], axis=-1).astype(jnp.int32)
    pos = (tok - cu_lens[seg]).astype(jnp.float32)
    inv_freq = 1.0 / (10000.0 ** (jnp.arange(0, D, 2, dtype=jnp.float32) / D))
    freqs = pos[:, None] * inv_freq[None, :]                       # (T, D/2)
    cos_d = jnp.concatenate([jnp.cos(freqs), jnp.cos(freqs)], -1)  # (T, D)
    sin_d = jnp.concatenate([jnp.sin(freqs), jnp.sin(freqs)], -1)
    cos_e = jnp.tile(cos_d, (1, H))                                # (T, E)
    sin_e = jnp.tile(sin_d, (1, H))

    starts = cu_lens[seg].astype(jnp.int32)[:, None]               # (T, 1)
    ends = cu_lens[seg + 1].astype(jnp.int32)[:, None]             # (T, 1)

    # ---- fold rotate_half into extra projection columns (signed column perm)
    col = jnp.arange(E)
    col_l = col % D
    src = jnp.where(col_l < half, col + half, col - half)
    sgn = jnp.where(col_l < half, -1.0, 1.0).astype(bf16)

    def rot_cols(w_t, b):
        return w_t[:, src] * sgn[None, :], b[:, src] * sgn[None, :]

    wq_r, bq_r = rot_cols(params["wq_t"], params["bq"])
    wk_r, bk_r = rot_cols(params["wk_t"], params["bk"])
    w5 = jnp.concatenate([params["wq_t"], params["wk_t"], params["wv_t"],
                          wq_r, wk_r], axis=1)                     # (E, 5E)
    b5 = jnp.concatenate([params["bq"], params["bk"], params["bv"],
                          bq_r, bk_r], axis=1)                     # (1, 5E)

    # ---- tile sizes ----
    tt = _pick_tile(T, tok_tile, 8)
    tq = _pick_tile(T, q_tile, 8)
    tk = _pick_tile(T, kv_tile, 128)
    nt, nq, nk = T // tt, T // tq, T // tk

    cparams_rows = pltpu.CompilerParams(
        dimension_semantics=("parallel",),
        vmem_limit_bytes=32 * 1024 * 1024)

    # ---- stage 1: LN1 + fused QKV(+rot) projection + rotary combine ----
    q_te, k_te, v_te = pl.pallas_call(
        functools.partial(_ln_qkv_rope_kernel, embed_dim=E, scaling=scaling),
        grid=(nt,),
        in_specs=[
            pl.BlockSpec((tt, E), lambda i: (i, 0)),        # x
            pl.BlockSpec((tt, E), lambda i: (i, 0)),        # cos
            pl.BlockSpec((tt, E), lambda i: (i, 0)),        # sin
            pl.BlockSpec((1, E), lambda i: (0, 0)),         # ln1 gamma
            pl.BlockSpec((1, E), lambda i: (0, 0)),         # ln1 beta
            pl.BlockSpec((E, 5 * E), lambda i: (0, 0)),     # packed weights
            pl.BlockSpec((1, 5 * E), lambda i: (0, 0)),     # packed biases
        ],
        out_specs=(pl.BlockSpec((tt, E), lambda i: (i, 0)),
                   pl.BlockSpec((tt, E), lambda i: (i, 0)),
                   pl.BlockSpec((tt, E), lambda i: (i, 0))),
        out_shape=(jax.ShapeDtypeStruct((T, E), bf16),
                   jax.ShapeDtypeStruct((T, E), bf16),
                   jax.ShapeDtypeStruct((T, E), bf16)),
        compiler_params=cparams_rows,
    )(x, cos_e, sin_e, params["ln1_g"], params["ln1_b"], w5, b5)

    # ---- stage 2: flash attention over (heads, q-tiles, kv-tiles) ----
    q_h = q_te.reshape(T, H, D).transpose(1, 0, 2)       # (H, T, D)
    kT_h = k_te.reshape(T, H, D).transpose(1, 2, 0)      # (H, D, T)  pre-transposed
    v_h = v_te.reshape(T, H, D).transpose(1, 0, 2)       # (H, T, D)

    q_min = jnp.min(starts[:, 0].reshape(nq, tq), axis=1).astype(jnp.int32)
    q_max = jnp.max(ends[:, 0].reshape(nq, tq), axis=1).astype(jnp.int32)

    grid_spec = pltpu.PrefetchScalarGridSpec(
        num_scalar_prefetch=2,
        grid=(H, nq, nk),
        in_specs=[
            pl.BlockSpec((tq, 1), lambda h, i, j, *_: (i, 0)),          # starts
            pl.BlockSpec((tq, 1), lambda h, i, j, *_: (i, 0)),          # ends
            pl.BlockSpec((None, tq, D), lambda h, i, j, *_: (h, i, 0)),  # q
            pl.BlockSpec((None, D, tk), lambda h, i, j, *_: (h, 0, j)),  # k^T
            pl.BlockSpec((None, tk, D), lambda h, i, j, *_: (h, j, 0)),  # v
        ],
        out_specs=pl.BlockSpec((None, tq, D), lambda h, i, j, *_: (h, i, 0)),
        scratch_shapes=[pltpu.VMEM((tq, 1), jnp.float32),    # m
                        pltpu.VMEM((tq, 1), jnp.float32),    # l
                        pltpu.VMEM((tq, D), jnp.float32)],   # acc
    )
    ctx_h = pl.pallas_call(
        functools.partial(_flash_attn_kernel, kv_tile=tk),
        grid_spec=grid_spec,
        out_shape=jax.ShapeDtypeStruct((H, T, D), bf16),
        compiler_params=pltpu.CompilerParams(
            dimension_semantics=("parallel", "parallel", "arbitrary"),
            vmem_limit_bytes=32 * 1024 * 1024),
    )(q_min, q_max, starts, ends, q_h, kT_h, v_h)

    ctx_te = ctx_h.transpose(1, 0, 2).reshape(T, E)

    # ---- stage 3: output projection + residual + LN2 + GELU MLP + residual --
    out = pl.pallas_call(
        _out_proj_mlp_kernel,
        grid=(nt,),
        in_specs=[
            pl.BlockSpec((tt, E), lambda i: (i, 0)),   # x
            pl.BlockSpec((tt, E), lambda i: (i, 0)),   # ctx (all heads)
            pl.BlockSpec((E, E), lambda i: (0, 0)),    # wo_t
            pl.BlockSpec((1, E), lambda i: (0, 0)),    # bo
            pl.BlockSpec((1, E), lambda i: (0, 0)),    # ln2 gamma
            pl.BlockSpec((1, E), lambda i: (0, 0)),    # ln2 beta
            pl.BlockSpec((E, F), lambda i: (0, 0)),    # w1_t
            pl.BlockSpec((1, F), lambda i: (0, 0)),    # b1
            pl.BlockSpec((F, E), lambda i: (0, 0)),    # w2_t
            pl.BlockSpec((1, E), lambda i: (0, 0)),    # b2
        ],
        out_specs=pl.BlockSpec((tt, E), lambda i: (i, 0)),
        out_shape=jax.ShapeDtypeStruct((T, E), x.dtype),
        compiler_params=cparams_rows,
    )(x, ctx_te, params["wo_t"], params["bo"], params["ln2_g"], params["ln2_b"],
      params["w1_t"], params["b1"], params["w2_t"], params["b2"])
    return out


# -----------------------------------------------------------------------------
# deterministic parameter init (mirrors the PyTorch module's __init__)
# -----------------------------------------------------------------------------
def init_params(key, embed_dim, ffn_embed_dim):
    E, F = embed_dim, ffn_embed_dim
    ks = jax.random.split(key, 12)
    bf16 = jnp.bfloat16

    def xavier(k, shape, gain):
        fan_out, fan_in = shape
        bound = gain * math.sqrt(6.0 / (fan_in + fan_out))
        return jax.random.uniform(k, shape, jnp.float32, -bound, bound)

    def default_bias(k, fan_in, n):
        bound = 1.0 / math.sqrt(fan_in)
        return jax.random.uniform(k, (1, n), jnp.float32, -bound, bound)

    def kaiming(k, shape):  # nn.Linear default: kaiming_uniform(a=sqrt(5))
        fan_in = shape[1]
        bound = math.sqrt(6.0 / (6.0 * fan_in))
        return jax.random.uniform(k, shape, jnp.float32, -bound, bound)

    g = 1.0 / math.sqrt(2.0)
    wq, wk, wv = (xavier(ks[i], (E, E), g) for i in range(3))
    wo = xavier(ks[3], (E, E), 1.0)
    w1, w2 = kaiming(ks[4], (F, E)), kaiming(ks[5], (E, F))

    return dict(
        wq_t=wq.T.astype(bf16), wk_t=wk.T.astype(bf16),
        wv_t=wv.T.astype(bf16), wo_t=wo.T.astype(bf16),
        bq=default_bias(ks[6], E, E).astype(bf16),
        bk=default_bias(ks[7], E, E).astype(bf16),
        bv=default_bias(ks[8], E, E).astype(bf16),
        bo=default_bias(ks[9], E, E).astype(bf16),
        w1_t=w1.T.astype(bf16), b1=default_bias(ks[10], E, F).astype(bf16),
        w2_t=w2.T.astype(bf16), b2=default_bias(ks[11], F, E).astype(bf16),
        ln1_g=jnp.ones((1, E), bf16), ln1_b=jnp.zeros((1, E), bf16),
        ln2_g=jnp.ones((1, E), bf16), ln2_b=jnp.zeros((1, E), bf16),
    )


# -----------------------------------------------------------------------------
# pure-JAX reference (same semantics as the PyTorch module) for a sanity check
# -----------------------------------------------------------------------------
def ref_forward(x, cu_lens, max_len, p, num_heads):
    del max_len
    f32, bf16 = jnp.float32, jnp.bfloat16
    T, E = x.shape
    D = E // num_heads
    scaling = D ** (-0.5)

    tok = jnp.arange(T, dtype=jnp.int32)
    seg = jnp.sum(tok[:, None] >= cu_lens[None, 1:], axis=-1).astype(jnp.int32)
    pos = (tok - cu_lens[seg]).astype(f32)
    inv_freq = 1.0 / (10000.0 ** (jnp.arange(0, D, 2, dtype=f32) / D))
    freqs = pos[:, None] * inv_freq[None, :]
    cos = jnp.concatenate([jnp.cos(freqs)] * 2, -1)
    sin = jnp.concatenate([jnp.sin(freqs)] * 2, -1)

    def ln(v, gm, bt):
        return _layer_norm_f32(v.astype(f32), gm.astype(f32),
                               bt.astype(f32)).astype(bf16)

    h = ln(x, p["ln1_g"], p["ln1_b"])
    q = ((jnp.dot(h, p["wq_t"], preferred_element_type=f32)
          + p["bq"].astype(f32)) * scaling).astype(bf16)
    k = (jnp.dot(h, p["wk_t"], preferred_element_type=f32)
         + p["bk"].astype(f32)).astype(bf16)
    v = (jnp.dot(h, p["wv_t"], preferred_element_type=f32)
         + p["bv"].astype(f32)).astype(bf16)

    mask = seg[:, None] == seg[None, :]
    acc = jnp.zeros((T, E), f32)
    for hh in range(num_heads):
        sl = slice(hh * D, (hh + 1) * D)

        def rope(t):
            t = t.astype(f32)
            t1, t2 = t[:, : D // 2], t[:, D // 2:]
            return (t * cos + jnp.concatenate([-t2, t1], -1) * sin).astype(bf16)

        qh, kh, vh = rope(q[:, sl]), rope(k[:, sl]), v[:, sl]
        s = lax.dot_general(qh, kh, (((1,), (1,)), ((), ())),
                            preferred_element_type=f32)
        s = jnp.where(mask, s, -1e30)
        s = s - jnp.max(s, -1, keepdims=True)
        pr = jnp.exp(s)
        pr = pr / jnp.sum(pr, -1, keepdims=True)
        ctx = jnp.dot(pr.astype(bf16), vh, preferred_element_type=f32).astype(bf16)
        acc = acc + jnp.dot(ctx, p["wo_t"][sl, :], preferred_element_type=f32)
    x1 = x + (acc + p["bo"].astype(f32)).astype(bf16)

    h2 = ln(x1, p["ln2_g"], p["ln2_b"])
    f1 = (jnp.dot(h2, p["w1_t"], preferred_element_type=f32)
          + p["b1"].astype(f32))
    g = _gelu_exact(f1).astype(bf16)
    f2 = (jnp.dot(g, p["w2_t"], preferred_element_type=f32)
          + p["b2"].astype(f32)).astype(bf16)
    return x1 + f2


# -----------------------------------------------------------------------------
if __name__ == "__main__":
    embed_dim, attention_heads, ffn_embed_dim = 64, 4, 128
    seq_lens = [100, 156]                      # two packed sequences, T = 256
    T = sum(seq_lens)
    cu_lens = jnp.array([0, 100, 256], dtype=jnp.int32)
    max_len = max(seq_lens)

    key = jax.random.PRNGKey(0)
    kx, kp = jax.random.split(key)
    x = jax.random.normal(kx, (T, embed_dim), jnp.float32).astype(jnp.bfloat16)
    params = init_params(kp, embed_dim, ffn_embed_dim)

    out = flash_transformer_layer(x, cu_lens, max_len, params, attention_heads,
                                  tok_tile=128, q_tile=64, kv_tile=128)
    out = jax.block_until_ready(out)
    assert out.shape == (T, embed_dim) and out.dtype == jnp.bfloat16

    ref = ref_forward(x, cu_lens, max_len, params, attention_heads)
    np.testing.assert_allclose(np.asarray(out, np.float32),
                               np.asarray(ref, np.float32),
                               rtol=1e-1, atol=1e-1)
    # TODO(synk): dropout is a no-op here (module default dropout=0.0).
    print("KERNEL_OK")
</pallas_src>

<mosaic_0001>
module attributes {stable_mosaic.version = 11 : i64} {
  func.func @_ln_qkv_rope_kernel(%arg0: i32, %arg1: memref<128x64xbf16, #tpu.memory_space<vmem>>, %arg2: memref<128x64xf32, #tpu.memory_space<vmem>>, %arg3: memref<128x64xf32, #tpu.memory_space<vmem>>, %arg4: memref<1x64xbf16, #tpu.memory_space<vmem>>, %arg5: memref<1x64xbf16, #tpu.memory_space<vmem>>, %arg6: memref<64x320xbf16, #tpu.memory_space<vmem>>, %arg7: memref<1x320xbf16, #tpu.memory_space<vmem>>, %arg8: memref<128x64xbf16, #tpu.memory_space<vmem>>, %arg9: memref<128x64xbf16, #tpu.memory_space<vmem>>, %arg10: memref<128x64xbf16, #tpu.memory_space<vmem>>) attributes {dimension_semantics = [#tpu.dimension_semantics<parallel>], iteration_bounds = array<i64: 2>, scalar_prefetch = 0 : i64, scratch_operands = 0 : i64, tpu.core_type = #tpu.core_type<tc>, window_params = [{transform_indices = @transform_0, window_bounds = array<i64: 128, 64>}, {transform_indices = @transform_1, window_bounds = array<i64: 128, 64>}, {transform_indices = @transform_2, window_bounds = array<i64: 128, 64>}, {pipeline_mode = #tpu.pipeline_mode<synchronous>, transform_indices = @transform_3, window_bounds = array<i64: 1, 64>}, {pipeline_mode = #tpu.pipeline_mode<synchronous>, transform_indices = @transform_4, window_bounds = array<i64: 1, 64>}, {pipeline_mode = #tpu.pipeline_mode<synchronous>, transform_indices = @transform_5, window_bounds = array<i64: 64, 320>}, {pipeline_mode = #tpu.pipeline_mode<synchronous>, transform_indices = @transform_6, window_bounds = array<i64: 1, 320>}, {transform_indices = @transform_7, window_bounds = array<i64: 128, 64>}, {transform_indices = @transform_8, window_bounds = array<i64: 128, 64>}, {transform_indices = @transform_9, window_bounds = array<i64: 128, 64>}]} {
    %c0 = arith.constant 0 : index
    %c0_0 = arith.constant 0 : index
    %0 = vector.load %arg1[%c0, %c0_0] : memref<128x64xbf16, #tpu.memory_space<vmem>>, vector<128x64xbf16>
    %1 = arith.extf %0 : vector<128x64xbf16> to vector<128x64xf32>
    %c0_1 = arith.constant 0 : index
    %c0_2 = arith.constant 0 : index
    %2 = vector.load %arg4[%c0_1, %c0_2] : memref<1x64xbf16, #tpu.memory_space<vmem>>, vector<1x64xbf16>
    %3 = arith.extf %2 : vector<1x64xbf16> to vector<1x64xf32>
    %c0_3 = arith.constant 0 : index
    %c0_4 = arith.constant 0 : index
    %4 = vector.load %arg5[%c0_3, %c0_4] : memref<1x64xbf16, #tpu.memory_space<vmem>>, vector<1x64xbf16>
    %5 = arith.extf %4 : vector<1x64xbf16> to vector<1x64xf32>
    %cst = arith.constant dense<0.000000e+00> : vector<128xf32>
    %6 = vector.multi_reduction <add>, %1, %cst [1] : vector<128x64xf32> to vector<128xf32>
    %7 = vector.shape_cast %6 : vector<128xf32> to vector<128x1xf32>
    %cst_5 = arith.constant 6.400000e+01 : f32
    %8 = vector.broadcast %cst_5 : f32 to vector<128x1xf32>
    %9 = arith.divf %7, %8 : vector<128x1xf32>
    %10 = vector.broadcast %9 : vector<128x1xf32> to vector<128x64xf32>
    %11 = arith.subf %1, %10 : vector<128x64xf32>
    %12 = arith.mulf %11, %11 : vector<128x64xf32>
    %cst_6 = arith.constant dense<0.000000e+00> : vector<128xf32>
    %13 = vector.multi_reduction <add>, %12, %cst_6 [1] : vector<128x64xf32> to vector<128xf32>
    %14 = vector.shape_cast %13 : vector<128xf32> to vector<128x1xf32>
    %cst_7 = arith.constant 6.400000e+01 : f32
    %15 = vector.broadcast %cst_7 : f32 to vector<128x1xf32>
    %16 = arith.divf %14, %15 : vector<128x1xf32>
    %17 = vector.broadcast %9 : vector<128x1xf32> to vector<128x64xf32>
    %18 = arith.subf %1, %17 : vector<128x64xf32>
    %cst_8 = arith.constant 9.99999974E-6 : f32
    %19 = vector.broadcast %cst_8 : f32 to vector<128x1xf32>
    %20 = arith.addf %16, %19 : vector<128x1xf32>
    %21 = math.rsqrt %20 : vector<128x1xf32>
    %22 = vector.broadcast %21 : vector<128x1xf32> to vector<128x64xf32>
    %23 = arith.mulf %18, %22 : vector<128x64xf32>
    %24 = vector.broadcast %3 : vector<1x64xf32> to vector<128x64xf32>
    %25 = arith.mulf %23, %24 : vector<128x64xf32>
    %26 = vector.broadcast %5 : vector<1x64xf32> to vector<128x64xf32>
    %27 = arith.addf %25, %26 : vector<128x64xf32>
    %28 = arith.truncf %27 : vector<128x64xf32> to vector<128x64xbf16>
    %c0_9 = arith.constant 0 : index
    %c0_10 = arith.constant 0 : index
    %29 = vector.load %arg6[%c0_9, %c0_10] : memref<64x320xbf16, #tpu.memory_space<vmem>>, vector<64x320xbf16>
    %cst_11 = arith.constant dense<0.000000e+00> : vector<128x320xf32>
    %30 = tpu.matmul %28, %29, %cst_11 {dimension_numbers = #tpu.dot_dimension_numbers<[1], [0], [0], [1], [0, 0, 1, 1], [], []>} : vector<128x64xbf16>, vector<64x320xbf16>, vector<128x320xf32> -> vector<128x320xf32>
    %c0_12 = arith.constant 0 : index
    %c0_13 = arith.constant 0 : index
    %31 = vector.load %arg7[%c0_12, %c0_13] : memref<1x320xbf16, #tpu.memory_space<vmem>>, vector<1x320xbf16>
    %32 = arith.extf %31 : vector<1x320xbf16> to vector<1x320xf32>
    %33 = vector.broadcast %32 : vector<1x320xf32> to vector<128x320xf32>
    %34 = arith.addf %30, %33 : vector<128x320xf32>
    %c0_14 = arith.constant 0 : index
    %c0_15 = arith.constant 0 : index
    %35 = vector.load %arg2[%c0_14, %c0_15] : memref<128x64xf32, #tpu.memory_space<vmem>>, vector<128x64xf32>
    %c0_16 = arith.constant 0 : index
    %c0_17 = arith.constant 0 : index
    %36 = vector.load %arg3[%c0_16, %c0_17] : memref<128x64xf32, #tpu.memory_space<vmem>>, vector<128x64xf32>
    %37 = vector.extract_strided_slice %34 {offsets = [0, 0], sizes = [128, 64], strides = [1, 1]} : vector<128x320xf32> to vector<128x64xf32>
    %38 = vector.extract_strided_slice %34 {offsets = [0, 64], sizes = [128, 64], strides = [1, 1]} : vector<128x320xf32> to vector<128x64xf32>
    %39 = vector.extract_strided_slice %34 {offsets = [0, 128], sizes = [128, 64], strides = [1, 1]} : vector<128x320xf32> to vector<128x64xf32>
    %40 = vector.extract_strided_slice %34 {offsets = [0, 192], sizes = [128, 64], strides = [1, 1]} : vector<128x320xf32> to vector<128x64xf32>
    %41 = vector.extract_strided_slice %34 {offsets = [0, 256], sizes = [128, 64], strides = [1, 1]} : vector<128x320xf32> to vector<128x64xf32>
    %42 = arith.mulf %37, %35 : vector<128x64xf32>
    %43 = arith.mulf %40, %36 : vector<128x64xf32>
    %44 = arith.addf %42, %43 : vector<128x64xf32>
    %cst_18 = arith.constant 2.500000e-01 : f32
    %45 = vector.broadcast %cst_18 : f32 to vector<128x64xf32>
    %46 = arith.mulf %44, %45 : vector<128x64xf32>
    %47 = arith.truncf %46 : vector<128x64xf32> to vector<128x64xbf16>
    %c0_19 = arith.constant 0 : index
    %c0_20 = arith.constant 0 : index
    %48 = vector.load %arg8[%c0_19, %c0_20] : memref<128x64xbf16, #tpu.memory_space<vmem>>, vector<128x64xbf16>
    tpu.vector_store %arg8[%c0_19, %c0_20], %47 {strides = array<i32>} : memref<128x64xbf16, #tpu.memory_space<vmem>>, vector<128x64xbf16>,
    %49 = arith.mulf %38, %35 : vector<128x64xf32>
    %50 = arith.mulf %41, %36 : vector<128x64xf32>
    %51 = arith.addf %49, %50 : vector<128x64xf32>
    %52 = arith.truncf %51 : vector<128x64xf32> to vector<128x64xbf16>
    %c0_21 = arith.constant 0 : index
    %c0_22 = arith.constant 0 : index
    %53 = vector.load %arg9[%c0_21, %c0_22] : memref<128x64xbf16, #tpu.memory_space<vmem>>, vector<128x64xbf16>
    tpu.vector_store %arg9[%c0_21, %c0_22], %52 {strides = array<i32>} : memref<128x64xbf16, #tpu.memory_space<vmem>>, vector<128x64xbf16>,
    %54 = arith.truncf %39 : vector<128x64xf32> to vector<128x64xbf16>
    %c0_23 = arith.constant 0 : index
    %c0_24 = arith.constant 0 : index
    %55 = vector.load %arg10[%c0_23, %c0_24] : memref<128x64xbf16, #tpu.memory_space<vmem>>, vector<128x64xbf16>
    tpu.vector_store %arg10[%c0_23, %c0_24], %54 {strides = array<i32>} : memref<128x64xbf16, #tpu.memory_space<vmem>>, vector<128x64xbf16>,
    return
  }
  func.func @transform_0(%arg0: i32) -> (i32, i32) {
    %c0_i32 = arith.constant 0 : i32
    %c0_i32_0 = arith.constant 0 : i32
    return %arg0, %c0_i32 : i32, i32
  }
  func.func @transform_1(%arg0: i32) -> (i32, i32) {
    %c0_i32 = arith.constant 0 : i32
    %c0_i32_0 = arith.constant 0 : i32
    return %arg0, %c0_i32 : i32, i32
  }
  func.func @transform_2(%arg0: i32) -> (i32, i32) {
    %c0_i32 = arith.constant 0 : i32
    %c0_i32_0 = arith.constant 0 : i32
    return %arg0, %c0_i32 : i32, i32
  }
  func.func @transform_3(%arg0: i32) -> (i32, i32) {
    %c0_i32 = arith.constant 0 : i32
    %c0_i32_0 = arith.constant 0 : i32
    %c0_i32_1 = arith.constant 0 : i32
    return %c0_i32, %c0_i32_0 : i32, i32
  }
  func.func @transform_4(%arg0: i32) -> (i32, i32) {
    %c0_i32 = arith.constant 0 : i32
    %c0_i32_0 = arith.constant 0 : i32
    %c0_i32_1 = arith.constant 0 : i32
    return %c0_i32, %c0_i32_0 : i32, i32
  }
  func.func @transform_5(%arg0: i32) -> (i32, i32) {
    %c0_i32 = arith.constant 0 : i32
    %c0_i32_0 = arith.constant 0 : i32
    %c0_i32_1 = arith.constant 0 : i32
    return %c0_i32, %c0_i32_0 : i32, i32
  }
  func.func @transform_6(%arg0: i32) -> (i32, i32) {
    %c0_i32 = arith.constant 0 : i32
    %c0_i32_0 = arith.constant 0 : i32
    %c0_i32_1 = arith.constant 0 : i32
    return %c0_i32, %c0_i32_0 : i32, i32
  }
  func.func @transform_7(%arg0: i32) -> (i32, i32) {
    %c0_i32 = arith.constant 0 : i32
    %c0_i32_0 = arith.constant 0 : i32
    return %arg0, %c0_i32 : i32, i32
  }
  func.func @transform_8(%arg0: i32) -> (i32, i32) {
    %c0_i32 = arith.constant 0 : i32
    %c0_i32_0 = arith.constant 0 : i32
    return %arg0, %c0_i32 : i32, i32
  }
  func.func @transform_9(%arg0: i32) -> (i32, i32) {
    %c0_i32 = arith.constant 0 : i32
    %c0_i32_0 = arith.constant 0 : i32
    return %arg0, %c0_i32 : i32, i32
  }
}

</mosaic_0001>

<bundles_post_ra>
// kernel: tpu_custom_call.1
= control target key start
LH: loop header
LB: loop body
LE: loop exit
PB: predicated region body
PF: predicated region fallthrough
CT: control target
= control target key end

     0   :  { %s2224_s30 = smov 0   ;;  %s3151_s0 = inlined_call_operand.vmem [shape: bf16[256,64], index: 0, kind: input, shape index: {}]   ;;  %s3152_s1 = inlined_call_operand.vmem [shape: f32[256,64], index: 1, kind: input, shape index: {}]   ;;  %s3153_s2 = inlined_call_operand.vmem [shape: f32[256,64], index: 2, kind: input, shape index: {}]   ;;  %s3154_s3 = inlined_call_operand.vmem [shape: bf16[1,64], index: 3, kind: input, shape index: {}]   ;;  %s3155_s4 = inlined_call_operand.vmem [shape: bf16[1,64], index: 4, kind: input, shape index: {}]   ;;  %s3156_s5 = inlined_call_operand.vmem [shape: bf16[64,320], index: 5, kind: input, shape index: {}]   ;;  %s3157_s6 = inlined_call_operand.vmem [shape: bf16[1,320], index: 6, kind: input, shape index: {}]   ;;  %s3158_s7 = inlined_call_operand.vmem [shape: bf16[256,64], index: 7, kind: output, shape index: {0}]   ;;  %s3159_s8 = inlined_call_operand.vmem [shape: bf16[256,64], index: 8, kind: output, shape index: {1}]   ;;  %s3160_s9 = inlined_call_operand.vmem [shape: bf16[256,64], index: 9, kind: output, shape index: {2}]  }
   0x1 LB: > { %s1867_s10 = sadd.s32 4294967295, %s2170_s30   ;;  %p1871_p0 = scmp.ge.s32.totalorder %s2170_s30, 1  ;;  %s2170_s30 = sphi %s2224_s30, %s20_s30  }
   0x2   : > { %p315_p1 = scmp.lt.s32.totalorder %s2170_s30, 3 }
   0x4   : > { %p316_p2 = pnand %p1871_p0, %p315_p1 }
   0x5   : > { %s1872_s11 = sshll.u32 (!%p316_p2), %s1867_s10, 4  ;;  %vm444_vm0 = vcmask (!%p316_p2), 523264   ;;  %s2173_s20 = smov (!%p316_p2), 64   ;;  %vm1334_vm1 = vcmask (!%p316_p2), 519168  }
   0x6   : > { %319 = sbr.rel (%p316_p2) target bundleno = 838 (0x346), region = 48  ;;  %p372_p3 = scmp.lt.s32.totalorder (!%p316_p2), %s1872_s11, 31 }
   0xd   : > { %s3162_s11 = smov (!%p372_p3, %s1872_s11), 31 }
   0xe   : > { %s2235_s12 = sshll.u32 %s3162_s11, 2  ;;  %s1875_s16 = sshll.u32 %s3162_s11, 3 }
   0xf   : > { %s2241_s15 = scalar_lea.vmem %s3151_s0, %s2235_s12  ;;  %s2473_s19 = scalar_lea.vmem %s3153_s2, %s1875_s16 }
  0x10   : > { %v2244_v0 = vld [vmem:[%s2241_s15 + $0x30] sm:$0xff]   ;;  %v2247_v1 = vld [vmem:[%s2241_s15 + $0x38] sm:$0xff]   ;;  %v2254_v6 = vld [vmem:[%s2241_s15] sm:$0xff]   ;;  %s2551_s23 = scalar_lea.vmem %s3152_s1, %s1875_s16  ;;  %s2958_s11 = scalar_lea.vmem %s3158_s7, %s2235_s12 }
  0x11   : > { %v2036_v2 = vunpack.c.l.bf16 %v2244_v0  ;;  %v2040_v3 = vunpack.c.l.bf16 %v2247_v1  ;;  %v2037_v4 = vunpack.c.h.bf16 %v2244_v0  ;;  %v2041_v5 = vunpack.c.h.bf16 %v2247_v1  ;;  %v2267_v13 = vld [vmem:[%s2241_s15 + $0x8] sm:$0xff]   ;;  %v2278_v18 = vld [vmem:[%s2241_s15 + $0x10] sm:$0xff]   ;;  %v2289_v23 = vld [vmem:[%s2241_s15 + $0x18] sm:$0xff]   ;;  %s3114_s24 = scalar_lea.vmem %s3159_s8, %s2235_s12 }
  0x12   : > { %v2012_v11 = vunpack.c.l.bf16 %v2254_v6  ;;  %v2013_v12 = vunpack.c.h.bf16 %v2254_v6  ;;  %v2016_v16 = vunpack.c.l.bf16 %v2267_v13  ;;  %v2017_v17 = vunpack.c.h.bf16 %v2267_v13  ;;  %v2300_v28 = vld [vmem:[%s2241_s15 + $0x20] sm:$0xff]   ;;  %v2311_v33 = vld [vmem:[%s2241_s15 + $0x28] sm:$0xff]  }
  0x13   : > { %v481_v7 = vsel %vm444_vm0, %v2036_v2, 0.0  ;;  %v487_v8 = vsel %vm444_vm0, %v2040_v3, 0.0  ;;  %v484_v9 = vsel %vm444_vm0, %v2037_v4, 0.0  ;;  %v490_v10 = vsel %vm444_vm0, %v2041_v5, 0.0 }
  0x14   : > { %482 = vadd.xlane.f32.xlu0 %v481_v7  ;;  %488 = vadd.xlane.f32.xlu1 %v487_v8  ;;  %v445_v14 = vsel %vm444_vm0, %v2012_v11, 0.0  ;;  %v448_v15 = vsel %vm444_vm0, %v2013_v12, 0.0  ;;  %v451_v19 = vsel %vm444_vm0, %v2016_v16, 0.0  ;;  %v454_v20 = vsel %vm444_vm0, %v2017_v17, 0.0 }
  0x15   : > { %v2020_v21 = vunpack.c.l.bf16 %v2278_v18  ;;  %v2021_v22 = vunpack.c.h.bf16 %v2278_v18  ;;  %v2024_v26 = vunpack.c.l.bf16 %v2289_v23  ;;  %v2025_v27 = vunpack.c.h.bf16 %v2289_v23 }
  0x16   : > { %v2028_v31 = vunpack.c.l.bf16 %v2300_v28  ;;  %v2029_v32 = vunpack.c.h.bf16 %v2300_v28  ;;  %v2032_v36 = vunpack.c.l.bf16 %v2311_v33  ;;  %v2033_v37 = vunpack.c.h.bf16 %v2311_v33  ;;  %v2105_v33 = vld [vmem:[%s3156_s5] ss:$12 sps:$4 sm:$0xff]  }
  0x17   : > { %v457_v24 = vsel %vm444_vm0, %v2020_v21, 0.0  ;;  %v460_v25 = vsel %vm444_vm0, %v2021_v22, 0.0  ;;  %v463_v29 = vsel %vm444_vm0, %v2024_v26, 0.0  ;;  %v466_v30 = vsel %vm444_vm0, %v2025_v27, 0.0 }
  0x18   : > { %485 = vadd.xlane.f32.xlu0 %v484_v9  ;;  %491 = vadd.xlane.f32.xlu1 %v490_v10  ;;  %v469_v34 = vsel %vm444_vm0, %v2028_v31, 0.0  ;;  %v472_v35 = vsel %vm444_vm0, %v2029_v32, 0.0  ;;  %v475_v38 = vsel %vm444_vm0, %v2032_v36, 0.0  ;;  %v478_v39 = vsel %vm444_vm0, %v2033_v37, 0.0 }
  0x1c   : > { %446 = vadd.xlane.f32.xlu0 %v445_v14  ;;  %449 = vadd.xlane.f32.xlu1 %v448_v15 }
  0x20   : > { %452 = vadd.xlane.f32.xlu0 %v451_v19  ;;  %455 = vadd.xlane.f32.xlu1 %v454_v20 }
  0x24   : > { %458 = vadd.xlane.f32.xlu0 %v457_v24  ;;  %461 = vadd.xlane.f32.xlu1 %v460_v25 }
  0x28   : > { %464 = vadd.xlane.f32.xlu0 %v463_v29  ;;  %467 = vadd.xlane.f32.xlu1 %v466_v30 }
  0x2c   : > { %470 = vadd.xlane.f32.xlu0 %v469_v34  ;;  %473 = vadd.xlane.f32.xlu1 %v472_v35 }
  0x30   : > { %476 = vadd.xlane.f32.xlu0 %v475_v38  ;;  %479 = vadd.xlane.f32.xlu1 %v478_v39 }
  0xa1   : > { %v483_v40 = vpop.xlane.xlu0 %482  ;;  %v489_v41 = vpop.xlane.xlu1 %488 }
  0xa2   : > { %v506_v42 = vmul.f32 0.015625, %v483_v40  ;;  %v508_v43 = vmul.f32 0.015625, %v489_v41 }
  0xa4   : > { %v2327_v44 = vsub.f32 %v2036_v2, %v506_v42  ;;  %v2329_v45 = vsub.f32 %v2040_v3, %v508_v43 }
  0xa5   : > { %v486_v46 = vpop.xlane.xlu0 %485  ;;  %v492_v47 = vpop.xlane.xlu1 %491 }
  0xa6   : > { %v507_v48 = vmul.f32 0.015625, %v486_v46  ;;  %v509_v49 = vmul.f32 0.015625, %v492_v47  ;;  %v538_v50 = vmul.f32 %v2327_v44, %v2327_v44  ;;  %v540_v51 = vmul.f32 %v2329_v45, %v2329_v45 }
  0xa8   : > { %v2337_v52 = vsub.f32 %v2037_v4, %v507_v48  ;;  %v2341_v53 = vsub.f32 %v2041_v5, %v509_v49  ;;  %v578_v54 = vsel %vm444_vm0, %v538_v50, 0.0  ;;  %v584_v57 = vsel %vm444_vm0, %v540_v51, 0.0 }
  0xa9   : > { %579 = vadd.xlane.f32.xlu0 %v578_v54  ;;  %v447_v55 = vpop.xlane.xlu0 %446  ;;  %v450_v56 = vpop.xlane.xlu1 %449 }
  0xaa   : > { %v494_v58 = vmul.f32 0.015625, %v447_v55  ;;  %v539_v59 = vmul.f32 %v2337_v52, %v2337_v52  ;;  %v495_v60 = vmul.f32 0.015625, %v450_v56  ;;  %v541_v61 = vmul.f32 %v2341_v53, %v2341_v53 }
  0xac   : > { %v2351_v62 = vsub.f32 %v2012_v11, %v494_v58  ;;  %v581_v63 = vsel %vm444_vm0, %v539_v59, 0.0  ;;  %v2356_v0 = vsub.f32 %v2013_v12, %v495_v60  ;;  %v587_v2 = vsel %vm444_vm0, %v541_v61, 0.0  ;;  %v2103_v58 = vld [vmem:[%s3156_s5 + $0x4] ss:$12 sps:$4 sm:$0xff]   ;;  %v2106_v61 = vld [vmem:[%s3156_s5 + $0x1c] ss:$12 sps:$4 sm:$0xff]  }
  0xad   : > { %582 = vadd.xlane.f32.xlu1 %v581_v63  ;;  %585 = vadd.xlane.f32.xlu0 %v584_v57  ;;  %v453_v1 = vpop.xlane.xlu0 %452  ;;  %v456_v3 = vpop.xlane.xlu1 %455 }
  0xae   : > { %v496_v4 = vmul.f32 0.015625, %v453_v1  ;;  %v497_v5 = vmul.f32 0.015625, %v456_v3  ;;  %v526_v7 = vmul.f32 %v2351_v62, %v2351_v62  ;;  %v527_v8 = vmul.f32 %v2356_v0, %v2356_v0  ;;  %2085 = vmatprep.subr.bf16.mxu1 %v2103_v58  ;;  %836 = vmatprep.subr.bf16.mxu0 %v2103_v58  ;;  %v2108_v1 = vld [vmem:[%s3156_s5 + $0x18] ss:$12 sps:$4 sm:$0xff]   ;;  %v2111_v3 = vld [vmem:[%s3156_s5 + $0x30] ss:$12 sps:$4 sm:$0xff]  }
  0xaf   : > { %2089 = vmatpush1.bf16.msra.mxu1 %v2105_v33  ;;  %837 = vmatpush1.bf16.msra.mxu0 %v2105_v33  ;;  %v1061_v58 = vld [vmem:[%s2551_s23 + $0x78] sm:$0xff]  ;;  %v654_v33 = vlaneseq }
  0xb0   : > { %v2365_v9 = vsub.f32 %v2016_v16, %v496_v4  ;;  %v2369_v6 = vsub.f32 %v2017_v17, %v497_v5  ;;  %v542_v10 = vsel %vm444_vm0, %v526_v7, 0.0  ;;  %v545_v12 = vsel %vm444_vm0, %v527_v8, 0.0  ;;  %2086 = vmatprep.subr.bf16.mxu1 %v2106_v61  ;;  %838 = vmatprep.subr.bf16.mxu0 %v2106_v61  ;;  %v2112_v4 = vld [vmem:[%s3156_s5 + $0x4c] ss:$12 sps:$4 sm:$0xff]   ;;  %v2114_v5 = vld [vmem:[%s3156_s5 + $0x48] ss:$12 sps:$4 sm:$0xff]  }
  0xb1   : > { %588 = vadd.xlane.f32.xlu1 %v587_v2  ;;  %543 = vadd.xlane.f32.xlu0 %v542_v10  ;;  %v459_v11 = vpop.xlane.xlu0 %458  ;;  %v462_v14 = vpop.xlane.xlu1 %461  ;;  %v2109_v2 = vld [vmem:[%s3156_s5 + $0x34] ss:$12 sps:$4 sm:$0xff]   ;;  %v2172_v8 = vmov 0   ;;  %v2476_v10 = vld [vmem:[%s2473_s19 + $0x8] sm:$0xff] }
  0xb2   : > { %v498_v15 = vmul.f32 0.015625, %v459_v11  ;;  %v499_v19 = vmul.f32 0.015625, %v462_v14  ;;  %v528_v20 = vmul.f32 %v2365_v9, %v2365_v9  ;;  %v529_v16 = vmul.f32 %v2369_v6, %v2369_v6  ;;  %v2462_v7 = vld [vmem:[%s3156_s5 + $0x8] ss:$12 sps:$4 sm:$0xff]   ;;  %928 = vmatprep.mubr.bf16.mxu1 %v2172_v8  ;;  %868 = vmatprep.mubr.bf16.mxu0 %v2172_v8  ;;  %v2491_v14 = vld [vmem:[%s2473_s19] sm:$0xff] }
  0xb3   : > { %2090 = vmatpush1.bf16.msra.mxu1 %v2108_v1  ;;  %839 = vmatpush1.bf16.msra.mxu0 %v2108_v1  ;;  %v2481_v11 = vld [vmem:[%s2473_s19 + $0x10] sm:$0xff] }
  0xb4   : > { %v2379_v13 = vsub.f32 %v2020_v21, %v498_v15  ;;  %v2383_v17 = vsub.f32 %v2021_v22, %v499_v19  ;;  %v548_v24 = vsel %vm444_vm0, %v528_v20, 0.0  ;;  %v551_v29 = vsel %vm444_vm0, %v529_v16, 0.0  ;;  %2087 = vmatprep.subr.bf16.mxu1 %v2109_v2  ;;  %840 = vmatprep.subr.bf16.mxu0 %v2109_v2  ;;  %v2494_v15 = vld [vmem:[%s2473_s19 + $0x28] sm:$0xff]  ;;  %v2501_v19 = vld [vmem:[%s2473_s19 + $0x20] sm:$0xff]  ;;  %v2504_v20 = vld [vmem:[%s2473_s19 + $0x38] sm:$0xff] }
  0xb5   : > { %546 = vadd.xlane.f32.xlu1 %v545_v12  ;;  %549 = vadd.xlane.f32.xlu0 %v548_v24  ;;  %v465_v25 = vpop.xlane.xlu0 %464  ;;  %v468_v30 = vpop.xlane.xlu1 %467  ;;  %v2486_v12 = vld [vmem:[%s2473_s19 + $0x18] sm:$0xff]  ;;  %v2511_v16 = vld [vmem:[%s2473_s19 + $0x30] sm:$0xff]  ;;  %v2514_v24 = vld [vmem:[%s2473_s19 + $0x48] sm:$0xff] }
  0xb6   : > { %v500_v34 = vmul.f32 0.015625, %v465_v25  ;;  %v501_v35 = vmul.f32 0.015625, %v468_v30  ;;  %v530_v38 = vmul.f32 %v2379_v13, %v2379_v13  ;;  %v531_v21 = vmul.f32 %v2383_v17, %v2383_v17  ;;  %v2521_v25 = vld [vmem:[%s2473_s19 + $0x40] sm:$0xff]  ;;  %v2531_v30 = vld [vmem:[%s2473_s19 + $0x50] sm:$0xff] }
  0xb7   : > { %2091 = vmatpush1.bf16.msra.mxu1 %v2111_v3  ;;  %841 = vmatpush1.bf16.msra.mxu0 %v2111_v3 }
  0xb8   : > { %v2393_v18 = vsub.f32 %v2024_v26, %v500_v34  ;;  %v2397_v22 = vsub.f32 %v2025_v27, %v501_v35  ;;  %v554_v39 = vsel %vm444_vm0, %v530_v38, 0.0  ;;  %v557_v41 = vsel %vm444_vm0, %v531_v21, 0.0  ;;  %2088 = vmatprep.subr.bf16.mxu1 %v2112_v4  ;;  %842 = vmatprep.subr.bf16.mxu0 %v2112_v4  ;;  %v2534_v34 = vld [vmem:[%s2473_s19 + $0x68] sm:$0xff]  ;;  %v2541_v35 = vld [vmem:[%s2473_s19 + $0x60] sm:$0xff]  ;;  %v2544_v38 = vld [vmem:[%s2473_s19 + $0x78] sm:$0xff] }
  0xb9   : > { %552 = vadd.xlane.f32.xlu1 %v551_v29  ;;  %555 = vadd.xlane.f32.xlu0 %v554_v39  ;;  %v471_v40 = vpop.xlane.xlu0 %470  ;;  %v474_v42 = vpop.xlane.xlu1 %473  ;;  %v2524_v29 = vld [vmem:[%s2473_s19 + $0x58] sm:$0xff]  ;;  %v2558_v21 = vld [vmem:[%s2473_s19 + $0x70] sm:$0xff]  ;;  %v2561_v39 = vld [vmem:[%s2551_s23] sm:$0xff]  ;;  %v2603_v4 = vshrl.u32 %v654_v33, 7  ;;  %s2729_s19 = scalar_lea.vmem %s3160_s9, %s2235_s12 }
  0xba   : > { %v502_v43 = vmul.f32 0.015625, %v471_v40  ;;  %v503_v46 = vmul.f32 0.015625, %v474_v42  ;;  %v532_v47 = vmul.f32 %v2393_v18, %v2393_v18  ;;  %v533_v26 = vmul.f32 %v2397_v22, %v2397_v22  ;;  %v2568_v40 = vld [vmem:[%s2551_s23 + $0x8] sm:$0xff]  ;;  %v1049_v42 = vld [vmem:[%s2551_s23 + $0x18] sm:$0xff] }
  0xbb   : > { %2092 = vmatpush1.bf16.msra.mxu1 %v2114_v5  ;;  %843 = vmatpush1.bf16.msra.mxu0 %v2114_v5 }
  0xbc   : > { %v2407_v23 = vsub.f32 %v2028_v31, %v502_v43  ;;  %v2411_v27 = vsub.f32 %v2029_v32, %v503_v46  ;;  %v560_v48 = vsel %vm444_vm0, %v532_v47, 0.0  ;;  %v563_v50 = vsel %vm444_vm0, %v533_v26, 0.0  ;;  %2061 = vmatprep.subr.bf16.mxu1 %v2462_v7  ;;  %v1050_v43 = vld [vmem:[%s2551_s23 + $0x20] sm:$0xff]  ;;  %v1051_v46 = vld [vmem:[%s2551_s23 + $0x28] sm:$0xff]  ;;  %v1052_v47 = vld [vmem:[%s2551_s23 + $0x30] sm:$0xff] }
  0xbd   : > { %558 = vadd.xlane.f32.xlu1 %v557_v41  ;;  %561 = vadd.xlane.f32.xlu0 %v560_v48  ;;  %v477_v49 = vpop.xlane.xlu0 %476  ;;  %v480_v51 = vpop.xlane.xlu1 %479  ;;  %v2571_v41 = vld [vmem:[%s2551_s23 + $0x10] sm:$0xff]  ;;  %v1053_v26 = vld [vmem:[%s2551_s23 + $0x38] sm:$0xff]  ;;  %v1054_v48 = vld [vmem:[%s2551_s23 + $0x40] sm:$0xff] }
  0xbe   : > { %v504_v54 = vmul.f32 0.015625, %v477_v49  ;;  %v505_v55 = vmul.f32 0.015625, %v480_v51  ;;  %v534_v56 = vmul.f32 %v2407_v23, %v2407_v23  ;;  %v535_v31 = vmul.f32 %v2411_v27, %v2411_v27  ;;  %v1055_v49 = vld [vmem:[%s2551_s23 + $0x48] sm:$0xff]  ;;  %v1057_v51 = vld [vmem:[%s2551_s23 + $0x58] sm:$0xff] }
  0xc0   : > { %v2421_v28 = vsub.f32 %v2032_v36, %v504_v54  ;;  %v2425_v32 = vsub.f32 %v2033_v37, %v505_v55  ;;  %v566_v57 = vsel %vm444_vm0, %v534_v56, 0.0  ;;  %v569_v59 = vsel %vm444_vm0, %v535_v31, 0.0  ;;  %v1058_v54 = vld [vmem:[%s2551_s23 + $0x60] sm:$0xff]  ;;  %v1059_v55 = vld [vmem:[%s2551_s23 + $0x68] sm:$0xff]  ;;  %v1060_v56 = vld [vmem:[%s2551_s23 + $0x70] sm:$0xff] }
  0xc1   : > { %564 = vadd.xlane.f32.xlu1 %v563_v50  ;;  %567 = vadd.xlane.f32.xlu0 %v566_v57  ;;  %v1056_v50 = vld [vmem:[%s2551_s23 + $0x50] sm:$0xff] }
  0xc2   : > { %v536_v60 = vmul.f32 %v2421_v28, %v2421_v28  ;;  %v537_v36 = vmul.f32 %v2425_v32, %v2425_v32 }
  0xc4   : > { %v572_v37 = vsel %vm444_vm0, %v536_v60, 0.0  ;;  %v575_v63 = vsel %vm444_vm0, %v537_v36, 0.0 }
  0xc5   : > { %570 = vadd.xlane.f32.xlu1 %v569_v59  ;;  %573 = vadd.xlane.f32.xlu0 %v572_v37 }
  0xc9   : > { %576 = vadd.xlane.f32.xlu1 %v575_v63 }
  0xda   : > { %1112 = vrot.lane.b32.xlu1 %v2476_v10, %s2173_s20 }
  0xdb   : > { %1110 = vrot.lane.b32.xlu0 %v2491_v14, %s2173_s20 }
  0xde   : > { %1114 = vrot.lane.b32.xlu1 %v2481_v11, %s2173_s20 }
  0xdf   : > { %1118 = vrot.lane.b32.xlu0 %v2501_v19, %s2173_s20 }
  0xe2   : > { %1116 = vrot.lane.b32.xlu1 %v2486_v12, %s2173_s20 }
  0xe3   : > { %1122 = vrot.lane.b32.xlu0 %v2511_v16, %s2173_s20 }
  0xe6   : > { %1120 = vrot.lane.b32.xlu1 %v2494_v15, %s2173_s20 }
  0xe7   : > { %1126 = vrot.lane.b32.xlu0 %v2521_v25, %s2173_s20 }
  0xea   : > { %1124 = vrot.lane.b32.xlu1 %v2504_v20, %s2173_s20 }
  0xeb   : > { %1130 = vrot.lane.b32.xlu0 %v2531_v30, %s2173_s20 }
  0xee   : > { %1128 = vrot.lane.b32.xlu1 %v2514_v24, %s2173_s20 }
  0xef   : > { %1134 = vrot.lane.b32.xlu0 %v2541_v35, %s2173_s20 }
  0xf2   : > { %1132 = vrot.lane.b32.xlu1 %v2524_v29, %s2173_s20 }
  0xf3   : > { %1138 = vrot.lane.b32.xlu0 %v2558_v21, %s2173_s20 }
  0xf6   : > { %1136 = vrot.lane.b32.xlu1 %v2534_v34, %s2173_s20 }
  0xf7   : > { %1369 = vrot.lane.b32.xlu0 %v2568_v40, %s2173_s20 }
  0xfa   : > { %1140 = vrot.lane.b32.xlu1 %v2544_v38, %s2173_s20 }
  0xfb   : > { %1373 = vrot.lane.b32.xlu0 %v1049_v42, %s2173_s20 }
  0xfe   : > { %1367 = vrot.lane.b32.xlu1 %v2561_v39, %s2173_s20 }
  0xff   : > { %1377 = vrot.lane.b32.xlu0 %v1051_v46, %s2173_s20 }
 0x102   : > { %1371 = vrot.lane.b32.xlu1 %v2571_v41, %s2173_s20 }
 0x103   : > { %1381 = vrot.lane.b32.xlu0 %v1053_v26, %s2173_s20 }
 0x106   : > { %1375 = vrot.lane.b32.xlu1 %v1050_v43, %s2173_s20  ;;  %v440_v43 = vld [vmem:[%s3154_s3] sm:$0x1] }
 0x107   : > { %1385 = vrot.lane.b32.xlu0 %v1055_v49, %s2173_s20  ;;  %v441_v49 = vunpack.c.l.bf16 %v440_v43 }
 0x10a   : > { %1379 = vrot.lane.b32.xlu1 %v1052_v47, %s2173_s20 }
 0x10b   : > { %1389 = vrot.lane.b32.xlu0 %v1057_v51, %s2173_s20 }
 0x10e   : > { %1383 = vrot.lane.b32.xlu1 %v1054_v48, %s2173_s20 }
 0x10f   : > { %1393 = vrot.lane.b32.xlu0 %v1059_v55, %s2173_s20  ;;  %v442_v55 = vld [vmem:[%s3155_s4] sm:$0x1] }
 0x112   : > { %1387 = vrot.lane.b32.xlu1 %v1056_v50, %s2173_s20  ;;  %v2609_v50 = vsub.s32 0, %v2603_v4 }
 0x113   : > { %1397 = vrot.lane.b32.xlu0 %v1061_v58, %s2173_s20 }
 0x114   : > { %v2616_v33 = vrot.slane %v441_v49, %v2609_v50 }
 0x116   : > { %1391 = vrot.lane.b32.xlu1 %v1058_v54, %s2173_s20 }
 0x11a   : > { %1395 = vrot.lane.b32.xlu1 %v1060_v56, %s2173_s20 }
 0x136   : > { %v580_v31 = vpop.xlane.xlu0 %579 }
 0x137   : > { %v602_v57 = vmul.f32 0.015625, %v580_v31 }
 0x139   : > { %v618_v59 = vadd.f32 1e-05, %v602_v57 }
 0x13a   : > { %v583_v60 = vpop.xlane.xlu1 %582  ;;  %v586_v36 = vpop.xlane.xlu0 %585 }
 0x13b   : > { %2119 = vrsqrt.f32 %v618_v59  ;;  %v603_v37 = vmul.f32 0.015625, %v583_v60  ;;  %v604_v61 = vmul.f32 0.015625, %v586_v36  ;;  %v443_v36 = vunpack.c.l.bf16 %v442_v55 }
 0x13d   : > { %v619_v63 = vadd.f32 1e-05, %v603_v37  ;;  %v620_v1 = vadd.f32 1e-05, %v604_v61 }
 0x13e   : > { %v589_v2 = vpop.xlane.xlu1 %588  ;;  %v544_v3 = vpop.xlane.xlu0 %543 }
 0x13f   : > { %2121 = vrsqrt.f32 %v619_v63  ;;  %v605_v5 = vmul.f32 0.015625, %v589_v2  ;;  %v590_v42 = vmul.f32 0.015625, %v544_v3 }
 0x140   : > { %2123 = vrsqrt.f32 %v620_v1 }
 0x141   : > { %v621_v46 = vadd.f32 1e-05, %v605_v5  ;;  %v606_v47 = vadd.f32 1e-05, %v590_v42 }
 0x142   : > { %v547_v26 = vpop.xlane.xlu1 %546  ;;  %v550_v48 = vpop.xlane.xlu0 %549 }
 0x143   : > { %2125 = vrsqrt.f32 %v621_v46  ;;  %v591_v51 = vmul.f32 0.015625, %v547_v26  ;;  %v592_v54 = vmul.f32 0.015625, %v550_v48  ;;  %v2621_v46 = vrot.slane %v443_v36, %v2609_v50 }
 0x144   : > { %2127 = vrsqrt.f32 %v606_v47 }
 0x145   : > { %v2120_v56 = vpop.eup %2119  ;;  %v607_v31 = vadd.f32 1e-05, %v591_v51  ;;  %v608_v57 = vadd.f32 1e-05, %v592_v54 }
 0x146   : > { %v650_v58 = vmul.f32 %v2120_v56, %v2327_v44  ;;  %v553_v59 = vpop.xlane.xlu1 %552  ;;  %v556_v60 = vpop.xlane.xlu0 %555 }
 0x147   : > { %2129 = vrsqrt.f32 %v607_v31  ;;  %v593_v37 = vmul.f32 0.015625, %v553_v59  ;;  %v594_v61 = vmul.f32 0.015625, %v556_v60 }
 0x148   : > { %2131 = vrsqrt.f32 %v608_v57  ;;  %v670_v44 = vmul.f32 %v2616_v33, %v650_v58 }
 0x149   : > { %v2122_v63 = vpop.eup %2121  ;;  %v609_v1 = vadd.f32 1e-05, %v593_v37  ;;  %v610_v2 = vadd.f32 1e-05, %v594_v61 }
 0x14a   : > { %v2124_v3 = vpop.eup %2123  ;;  %v651_v5 = vmul.f32 %v2122_v63, %v2337_v52  ;;  %v559_v42 = vpop.xlane.xlu1 %558  ;;  %v690_v58 = vadd.f32 %v2621_v46, %v670_v44 }
 0x14b   : > { %v562_v43 = vpop.xlane.xlu0 %561  ;;  %2133 = vrsqrt.f32 %v609_v1  ;;  %v595_v47 = vmul.f32 0.015625, %v559_v42  ;;  %v652_v51 = vmul.f32 %v2124_v3, %v2329_v45  ;;  %v2116_v45 = vld [vmem:[%s3156_s5 + $0x20] ss:$12 sps:$4 sm:$0xff]  }
 0x14c   : > { %v596_v26 = vmul.f32 0.015625, %v562_v43  ;;  %2135 = vrsqrt.f32 %v610_v2  ;;  %v671_v48 = vmul.f32 %v2616_v33, %v651_v5 }
 0x14d   : > { %v2126_v49 = vpop.eup %2125  ;;  %v611_v54 = vadd.f32 1e-05, %v595_v47  ;;  %v672_v3 = vmul.f32 %v2616_v33, %v652_v51 }
 0x14e   : > { %v612_v55 = vadd.f32 1e-05, %v596_v26  ;;  %v2128_v56 = vpop.eup %2127  ;;  %v653_v52 = vmul.f32 %v2126_v49, %v2341_v53  ;;  %v565_v31 = vpop.xlane.xlu1 %564  ;;  %v691_v59 = vadd.f32 %v2621_v46, %v671_v48  ;;  %v2117_v49 = vld [vmem:[%s3156_s5 + $0x38] ss:$12 sps:$4 sm:$0xff]  }
 0x14f   : > { %v568_v57 = vpop.xlane.xlu0 %567  ;;  %v638_v60 = vmul.f32 %v2128_v56, %v2351_v62  ;;  %2137 = vrsqrt.f32 %v611_v54  ;;  %v597_v36 = vmul.f32 0.015625, %v565_v31  ;;  %v692_v56 = vadd.f32 %v2621_v46, %v672_v3 }
 0x150   : > { %v598_v37 = vmul.f32 0.015625, %v568_v57  ;;  %2139 = vrsqrt.f32 %v612_v55  ;;  %v2629_v61 = vpack.c.bf16 %v691_v59, %v690_v58  ;;  %v673_v53 = vmul.f32 %v2616_v33, %v653_v52 }
 0x151   : > { %v2130_v63 = vpop.eup %2129  ;;  %v613_v1 = vadd.f32 1e-05, %v597_v36  ;;  %v658_v43 = vmul.f32 %v2616_v33, %v638_v60 }
 0x152   : > { %v614_v2 = vadd.f32 1e-05, %v598_v37  ;;  %v639_v5 = vmul.f32 %v2130_v63, %v2356_v0  ;;  %v571_v62 = vpop.xlane.xlu1 %570  ;;  %1902 = vmatmul.mubr.msk.bf16.vlgmr.msra.gmra.mrb[0].mxu1 %vm444_vm0, %v2629_v61  ;;  %v2132_v44 = vpop.eup %2131  ;;  %v693_v0 = vadd.f32 %v2621_v46, %v673_v53 }
 0x153   : > { %v574_v42 = vpop.xlane.xlu0 %573  ;;  %2141 = vrsqrt.f32 %v613_v1  ;;  %v599_v47 = vmul.f32 0.015625, %v571_v62  ;;  %2062 = vmatpush3.bf16.msra.mxu1 %v2462_v7  ;;  %938 = vmatprep.mubr.bf16.mxu1 %v2172_v8  ;;  %v640_v7 = vmul.f32 %v2132_v44, %v2365_v9  ;;  %v678_v58 = vadd.f32 %v2621_v46, %v658_v43  ;;  %v2118_v9 = vld [vmem:[%s3156_s5 + $0x50] ss:$12 sps:$4 sm:$0xff]  }
 0x154   : > { %v600_v26 = vmul.f32 0.015625, %v574_v42  ;;  %2143 = vrsqrt.f32 %v614_v2  ;;  %2063 = vmatprep.subr.bf16.mxu1 %v2116_v45  ;;  %v659_v48 = vmul.f32 %v2616_v33, %v639_v5  ;;  %v2653_v53 = vpack.c.bf16 %v693_v0, %v692_v56 }
 0x155   : > { %v2134_v51 = vpop.eup %2133  ;;  %v615_v54 = vadd.f32 1e-05, %v599_v47 }
 0x156   : > { %v616_v55 = vadd.f32 1e-05, %v600_v26  ;;  %v2136_v52 = vpop.eup %2135  ;;  %v641_v31 = vmul.f32 %v2134_v51, %v2369_v6  ;;  %v577_v57 = vpop.xlane.xlu1 %576  ;;  %v679_v59 = vadd.f32 %v2621_v46, %v659_v48 }
 0x157   : > { %v642_v60 = vmul.f32 %v2136_v52, %v2379_v13  ;;  %2145 = vrsqrt.f32 %v615_v54  ;;  %v601_v36 = vmul.f32 0.015625, %v577_v57  ;;  %2064 = vmatpush3.bf16.msra.mxu1 %v2116_v45  ;;  %v660_v13 = vmul.f32 %v2616_v33, %v640_v7 }
 0x158   : > { %v694_v37 = vpack.c.bf16 %v679_v59, %v678_v58  ;;  %2065 = vmatprep.subr.bf16.mxu1 %v2117_v49  ;;  %v661_v6 = vmul.f32 %v2616_v33, %v641_v31  ;;  %2147 = vrsqrt.f32 %v616_v55 }
 0x159   : > { %v2138_v63 = vpop.eup %2137  ;;  %v617_v1 = vadd.f32 1e-05, %v601_v36  ;;  %v662_v45 = vmul.f32 %v2616_v33, %v642_v60  ;;  %v680_v47 = vadd.f32 %v2621_v46, %v660_v13 }
 0x15a   : > { %v2140_v2 = vpop.eup %2139  ;;  %v643_v3 = vmul.f32 %v2138_v63, %v2383_v17  ;;  %1896 = vmatmul.mubr.msk.bf16.vlgmr.msra.gmra.mrb[0].mxu0 %vm444_vm0, %v694_v37  ;;  %1903 = vmatmul.mubr.msk.bf16.gmra.mrb[4].mxu1 %vm444_vm0, %v2653_v53  ;;  %v681_v5 = vadd.f32 %v2621_v46, %v661_v6 }
 0x15b   : > { %2149 = vrsqrt.f32 %v617_v1  ;;  %2066 = vmatpush3.bf16.msra.mxu1 %v2117_v49  ;;  %2069 = vmatprep.mubr.msk.bf16.mxu1 %vm444_vm0, %v694_v37  ;;  %v644_v42 = vmul.f32 %v2140_v2, %v2393_v18  ;;  %v682_v26 = vadd.f32 %v2621_v46, %v662_v45  ;;  %v727_v1 = vsub.s32 2, %v2603_v4 }
 0x15c   : > { %2067 = vmatprep.subr.bf16.mxu1 %v2118_v9  ;;  %878 = vmatprep.mubr.bf16.mxu0 %v2172_v8  ;;  %v663_v17 = vmul.f32 %v2616_v33, %v643_v3  ;;  %v695_v49 = vpack.c.bf16 %v681_v5, %v680_v47 }
 0x15d   : > { %v2142_v62 = vpop.eup %2141  ;;  %v664_v56 = vmul.f32 %v2616_v33, %v644_v42 }
 0x15e   : > { %v2144_v43 = vpop.eup %2143  ;;  %v645_v44 = vmul.f32 %v2142_v62, %v2397_v22  ;;  %v683_v48 = vadd.f32 %v2621_v46, %v663_v17  ;;  %v731_v62 = vsub.s32 4, %v2603_v4 }
 0x15f   : > { %v646_v0 = vmul.f32 %v2144_v43, %v2407_v23  ;;  %2068 = vmatpush3.bf16.msra.mxu1 %v2118_v9  ;;  %v684_v57 = vadd.f32 %v2621_v46, %v664_v56  ;;  %v1113_v43 = vpop.permute.xlu1 %1112 }
 0x160   : > { %v696_v51 = vpack.c.bf16 %v683_v48, %v682_v26  ;;  %v665_v54 = vmul.f32 %v2616_v33, %v645_v44  ;;  %v1111_v44 = vpop.permute.xlu0 %1110 }
 0x161   : > { %v2146_v55 = vpop.eup %2145  ;;  %v666_v22 = vmul.f32 %v2616_v33, %v646_v0 }
 0x162   : > { %v647_v18 = vmul.f32 %v2146_v55, %v2411_v27  ;;  %1897 = vmatmul.mubr.msk.bf16.gmra.mrb[4].mxu0 %vm444_vm0, %v695_v49  ;;  %2070 = vmatmul.mubr.msk.bf16.vlgmr.msra.gmra.mrb[8].mxu1 %vm444_vm0, %v695_v49  ;;  %v2148_v52 = vpop.eup %2147  ;;  %v685_v23 = vadd.f32 %v2621_v46, %v665_v54 }
 0x163   : > { %2073 = vmatprep.mubr.msk.bf16.mxu1 %vm444_vm0, %v696_v51  ;;  %888 = vmatprep.mubr.bf16.mxu0 %v2172_v8  ;;  %v648_v27 = vmul.f32 %v2148_v52, %v2421_v28  ;;  %v686_v59 = vadd.f32 %v2621_v46, %v666_v22 }
 0x164   : > { %v667_v7 = vmul.f32 %v2616_v33, %v647_v18  ;;  %v697_v36 = vpack.c.bf16 %v685_v23, %v684_v57 }
 0x165   : > { %v2150_v31 = vpop.eup %2149  ;;  %v668_v6 = vmul.f32 %v2616_v33, %v648_v27  ;;  %v1115_v27 = vpop.permute.xlu1 %1114 }
 0x166   : > { %v649_v58 = vmul.f32 %v2150_v31, %v2425_v32  ;;  %v687_v60 = vadd.f32 %v2621_v46, %v667_v7 }
 0x167   : > { %v688_v32 = vadd.f32 %v2621_v46, %v668_v6 }
 0x168   : > { %v698_v37 = vpack.c.bf16 %v687_v60, %v686_v59  ;;  %v669_v9 = vmul.f32 %v2616_v33, %v649_v58  ;;  %v718_v33 = vld [vmem:[%s3157_s6] sm:$0x7] }
 0x16a   : > { %1898 = vmatmul.mubr.msk.bf16.gmra.mrb[8].mxu0 %vm444_vm0, %v696_v51  ;;  %2074 = vmatmul.mubr.msk.bf16.gmra.mrb[12].mxu1 %vm444_vm0, %v697_v36  ;;  %v689_v28 = vadd.f32 %v2621_v46, %v669_v9  ;;  %v2711_v46 = vunpack.c.l.bf16 %v718_v33 }
 0x16b   : > { %2077 = vmatprep.mubr.msk.bf16.mxu1 %vm444_vm0, %v698_v37  ;;  %898 = vmatprep.mubr.bf16.mxu0 %v2172_v8 }
 0x16c   : > { %v699_v63 = vpack.c.bf16 %v689_v28, %v688_v32  ;;  %v732_v49 = vrot.slane %v2711_v46, %v731_v62 }
 0x16e   : > { %v2763_v57 = vrot.slane %v732_v49, %v2609_v50 }
 0x172   : > { %1899 = vmatmul.mubr.msk.bf16.gmra.mrb[12].mxu0 %vm444_vm0, %v697_v36  ;;  %2078 = vmatmul.mubr.msk.bf16.gmra.mrb[16].mxu1 %vm444_vm0, %v699_v63 }
 0x173   : > { %2081 = vmatprep.mubr.msk.bf16.mxu1 %vm444_vm0, %v2629_v61  ;;  %908 = vmatprep.mubr.bf16.mxu0 %v2172_v8  ;;  %v728_v61 = vrot.slane %v2711_v46, %v727_v1 }
 0x175   : > { %v2716_v2 = vrot.slane %v728_v61, %v2609_v50 }
 0x17a   : > { %1900 = vmatmul.mubr.msk.bf16.gmra.mrb[16].mxu0 %vm444_vm0, %v698_v37  ;;  %2082 = vmatmul.mubr.msk.bf16.gmra.mrb[20].mxu1 %vm444_vm0, %v2653_v53 }
 0x17b   : > { %918 = vmatprep.mubr.bf16.mxu0 %v2172_v8 }
 0x182   : > { %1901 = vmatmul.mubr.msk.bf16.gmra.mrb[20].mxu0 %vm444_vm0, %v699_v63 }
 0x225   : > { %v2718_v3 = vpop.f32.mrb[0].mxu1 }
 0x226   : > { %v932_v53 = vpop.f32.mrb[1].mxu1 }
 0x227   : > { %v2721_v8 = vadd.f32 %v932_v53, %v2716_v2  ;;  %v2723_v13 = vpop.f32.mrb[2].mxu1 }
 0x228   : > { %v936_v45 = vpop.f32.mrb[3].mxu1 }
 0x229   : > { %v2006_v5 = vpack.c.bf16 %v2721_v8, %v2721_v8  ;;  %v2734_v17 = vadd.f32 %v936_v45, %v2716_v2 }
 0x22b   : > { %1715 = vst.msk [vmem:[%s2729_s19 + $0x30] sm:$0xf] %vm1334_vm1, %v2006_v5  ;;  %v2007_v42 = vpack.c.bf16 %v2734_v17, %v2734_v17 }
 0x22d   : > { %1716 = vst.msk [vmem:[%s2729_s19 + $0x34] sm:$0xf] %vm1334_vm1, %v2007_v42  ;;  %v2743_v47 = vpop.f32.mrb[0].mxu0  ;;  %v2745_v26 = vpop.f32.mrb[4].mxu1 }
 0x22e   : > { %v872_v48 = vpop.f32.mrb[1].mxu0  ;;  %v942_v0 = vpop.f32.mrb[5].mxu1 }
 0x22f   : > { %v873_v4 = vadd.f32 %v872_v48, %v2716_v2  ;;  %v2750_v51 = vadd.f32 %v942_v0, %v2716_v2  ;;  %v2752_v54 = vpop.f32.mrb[2].mxu0  ;;  %v2754_v55 = vpop.f32.mrb[6].mxu1 }
 0x230   : > { %v876_v56 = vpop.f32.mrb[3].mxu0  ;;  %v946_v18 = vpop.f32.mrb[7].mxu1 }
 0x231   : > { %v1158_v22 = vmul.f32 %v1111_v44, %v873_v4  ;;  %v1994_v52 = vpack.c.bf16 %v873_v4, %v873_v4  ;;  %v2008_v23 = vpack.c.bf16 %v2750_v51, %v2750_v51  ;;  %v877_v7 = vadd.f32 %v876_v56, %v2716_v2 }
 0x232   : > { %v2760_v31 = vadd.f32 %v946_v18, %v2716_v2 }
 0x233   : > { %1703 = vst.msk [vmem:[%s2729_s19] sm:$0xf] %vm1334_vm1, %v1994_v52  ;;  %1717 = vst.msk [vmem:[%s2729_s19 + $0x38] sm:$0xf] %vm1334_vm1, %v2008_v23  ;;  %1190 = vrot.lane.b32.xlu0 %v1158_v22, %s2173_s20  ;;  %v1159_v58 = vmul.f32 %v1113_v43, %v877_v7  ;;  %v1995_v59 = vpack.c.bf16 %v877_v7, %v877_v7 }
 0x234   : > { %v2009_v60 = vpack.c.bf16 %v2760_v31, %v2760_v31 }
 0x235   : > { %v2772_v36 = vpop.f32.mrb[4].mxu0  ;;  %v2071_v37 = vpop.f32.mrb[8].mxu1  ;;  %1704 = vst.msk [vmem:[%s2729_s19 + $0x4] sm:$0xf] %vm1334_vm1, %v1995_v59  ;;  %1192 = vrot.lane.b32.xlu1 %v1159_v58, %s2173_s20 }
 0x236   : > { %1718 = vst.msk [vmem:[%s2729_s19 + $0x3c] sm:$0xf] %vm1334_vm1, %v2009_v60  ;;  %v992_v9 = vadd.f32 %v2071_v37, %v2763_v57  ;;  %v882_v6 = vpop.f32.mrb[5].mxu0  ;;  %v983_v28 = vpop.f32.mrb[9].mxu1 }
 0x237   : > { %v883_v32 = vadd.f32 %v882_v6, %v2716_v2  ;;  %v2781_v63 = vpop.f32.mrb[6].mxu0  ;;  %v2072_v33 = vpop.f32.mrb[10].mxu1  ;;  %v984_v61 = vadd.f32 %v983_v28, %v2763_v57 }
 0x238   : > { %v1433_v1 = vmul.f32 %v2481_v11, %v992_v9  ;;  %v886_v53 = vpop.f32.mrb[7].mxu0  ;;  %v986_v45 = vpop.f32.mrb[11].mxu1  ;;  %v995_v42 = vadd.f32 %v2072_v33, %v2763_v57 }
 0x239   : > { %v1160_v5 = vmul.f32 %v1115_v27, %v883_v32  ;;  %v1996_v62 = vpack.c.bf16 %v883_v32, %v883_v32  ;;  %v2787_v43 = vadd.f32 %v886_v53, %v2716_v2  ;;  %v1431_v11 = vmul.f32 %v2491_v14, %v984_v61  ;;  %v2825_v6 = vpop.permute.xlu1 %1116 }
 0x23a   : > { %1467 = vrot.lane.b32.xlu1 %v1433_v1, %s2173_s20  ;;  %v1434_v48 = vmul.f32 %v2486_v12, %v995_v42  ;;  %v987_v0 = vadd.f32 %v986_v45, %v2763_v57 }
 0x23b   : > { %1705 = vst.msk [vmem:[%s2729_s19 + $0x8] sm:$0xf] %vm1334_vm1, %v1996_v62  ;;  %v1997_v44 = vpack.c.bf16 %v2787_v43, %v2787_v43  ;;  %1194 = vrot.lane.b32.xlu0 %v1160_v5, %s2173_s20 }
 0x23c   : > { %v1432_v59 = vmul.f32 %v2476_v10, %v987_v0 }
 0x23d   : > { %1706 = vst.msk [vmem:[%s2729_s19 + $0xc] sm:$0xf] %vm1334_vm1, %v1997_v44  ;;  %v2800_v49 = vpop.f32.mrb[8].mxu0  ;;  %v2075_v4 = vpop.f32.mrb[12].mxu1 }
 0x23e   : > { %v1008_v56 = vadd.f32 %v2075_v4, %v2763_v57  ;;  %1463 = vrot.lane.b32.xlu1 %v1431_v11, %s2173_s20  ;;  %v892_v18 = vpop.f32.mrb[9].mxu0  ;;  %v999_v22 = vpop.f32.mrb[13].mxu1 }
 0x23f   : > { %v2805_v52 = vadd.f32 %v892_v18, %v2716_v2  ;;  %v2807_v14 = vpop.f32.mrb[10].mxu0  ;;  %v2076_v12 = vpop.f32.mrb[14].mxu1  ;;  %1469 = vrot.lane.b32.xlu0 %v1434_v48, %s2173_s20  ;;  %v1000_v7 = vadd.f32 %v999_v22, %v2763_v57 }
 0x240   : > { %v1437_v23 = vmul.f32 %v2511_v16, %v1008_v56  ;;  %v896_v27 = vpop.f32.mrb[11].mxu0  ;;  %v1002_v58 = vpop.f32.mrb[15].mxu1  ;;  %v1011_v37 = vadd.f32 %v2076_v12, %v2763_v57 }
 0x241   : > { %v1998_v60 = vpack.c.bf16 %v2805_v52, %v2805_v52  ;;  %v2817_v9 = vadd.f32 %v896_v27, %v2716_v2  ;;  %v1435_v10 = vmul.f32 %v2501_v19, %v1000_v7  ;;  %v1003_v32 = vadd.f32 %v1002_v58, %v2763_v57  ;;  %v1121_v18 = vpop.permute.xlu1 %1120 }
 0x242   : > { %1475 = vrot.lane.b32.xlu1 %v1437_v23, %s2173_s20  ;;  %v1438_v28 = vmul.f32 %v2504_v20, %v1011_v37 }
 0x243   : > { %1707 = vst.msk [vmem:[%s2729_s19 + $0x10] sm:$0xf] %vm1334_vm1, %v1998_v60  ;;  %v1999_v16 = vpack.c.bf16 %v2817_v9, %v2817_v9  ;;  %1465 = vrot.lane.b32.xlu0 %v1432_v59, %s2173_s20  ;;  %v1436_v48 = vmul.f32 %v2494_v15, %v1003_v32 }
 0x245   : > { %1708 = vst.msk [vmem:[%s2729_s19 + $0x14] sm:$0xf] %vm1334_vm1, %v1999_v16  ;;  %v2832_v33 = vpop.f32.mrb[12].mxu0  ;;  %v2079_v1 = vpop.f32.mrb[16].mxu1 }
 0x246   : > { %v1024_v61 = vadd.f32 %v2079_v1, %v2763_v57  ;;  %1471 = vrot.lane.b32.xlu1 %v1435_v10, %s2173_s20  ;;  %v902_v53 = vpop.f32.mrb[13].mxu0  ;;  %v1015_v45 = vpop.f32.mrb[17].mxu1 }
 0x247   : > { %v2837_v5 = vadd.f32 %v902_v53, %v2716_v2  ;;  %v2839_v19 = vpop.f32.mrb[14].mxu0  ;;  %v2080_v20 = vpop.f32.mrb[18].mxu1  ;;  %1477 = vrot.lane.b32.xlu0 %v1438_v28, %s2173_s20  ;;  %v1016_v42 = vadd.f32 %v1015_v45, %v2763_v57 }
 0x248   : > { %v1441_v62 = vmul.f32 %v2531_v30, %v1024_v61  ;;  %v906_v44 = vpop.f32.mrb[15].mxu0  ;;  %v1018_v11 = vpop.f32.mrb[19].mxu1  ;;  %v1027_v4 = vadd.f32 %v2080_v20, %v2763_v57 }
 0x249   : > { %v2000_v0 = vpack.c.bf16 %v2837_v5, %v2837_v5  ;;  %v2849_v56 = vadd.f32 %v906_v44, %v2716_v2  ;;  %v1439_v15 = vmul.f32 %v2521_v25, %v1016_v42  ;;  %v1019_v22 = vadd.f32 %v1018_v11, %v2763_v57  ;;  %v1119_v53 = vpop.permute.xlu0 %1118 }
 0x24a   : > { %1483 = vrot.lane.b32.xlu1 %v1441_v62, %s2173_s20  ;;  %v1442_v12 = vmul.f32 %v2524_v29, %v1027_v4 }
 0x24b   : > { %1709 = vst.msk [vmem:[%s2729_s19 + $0x18] sm:$0xf] %vm1334_vm1, %v2000_v0  ;;  %v2001_v30 = vpack.c.bf16 %v2849_v56, %v2849_v56  ;;  %1473 = vrot.lane.b32.xlu0 %v1436_v48, %s2173_s20  ;;  %v1440_v29 = vmul.f32 %v2514_v24, %v1019_v22  ;;  %v1125_v24 = vpop.permute.xlu1 %1124 }
 0x24d   : > { %1710 = vst.msk [vmem:[%s2729_s19 + $0x1c] sm:$0xf] %vm1334_vm1, %v2001_v30  ;;  %v2862_v23 = vpop.f32.mrb[16].mxu0  ;;  %v2083_v7 = vpop.f32.mrb[20].mxu1 }
 0x24e   : > { %v912_v27 = vpop.f32.mrb[17].mxu0  ;;  %v1031_v58 = vpop.f32.mrb[21].mxu1  ;;  %1479 = vrot.lane.b32.xlu1 %v1439_v15, %s2173_s20  ;;  %v1040_v28 = vadd.f32 %v2083_v7, %v2763_v57  ;;  %v1162_v7 = vmul.f32 %v1119_v53, %v2805_v52 }
 0x24f   : > { %v913_v59 = vadd.f32 %v912_v27, %v2716_v2  ;;  %v1032_v60 = vadd.f32 %v1031_v58, %v2763_v57  ;;  %v2867_v37 = vpop.f32.mrb[18].mxu0  ;;  %v2084_v25 = vpop.f32.mrb[22].mxu1  ;;  %1485 = vrot.lane.b32.xlu0 %v1442_v12, %s2173_s20  ;;  %v1163_v27 = vmul.f32 %v1121_v18, %v2817_v9 }
 0x250   : > { %v916_v16 = vpop.f32.mrb[19].mxu0  ;;  %v1034_v10 = vpop.f32.mrb[23].mxu1  ;;  %v1445_v62 = vmul.f32 %v2558_v21, %v1040_v28  ;;  %v1043_v42 = vadd.f32 %v2084_v25, %v2763_v57 }
 0x251   : > { %v2002_v32 = vpack.c.bf16 %v913_v59, %v913_v59  ;;  %v1443_v1 = vmul.f32 %v2541_v35, %v1032_v60  ;;  %v917_v61 = vadd.f32 %v916_v16, %v2716_v2  ;;  %v1035_v45 = vadd.f32 %v1034_v10, %v2763_v57  ;;  %v1123_v21 = vpop.permute.xlu0 %1122  ;;  %v1129_v22 = vpop.permute.xlu1 %1128 }
 0x252   : > { %v1161_v57 = vmul.f32 %v2825_v6, %v2787_v43  ;;  %v1446_v30 = vmul.f32 %v2544_v38, %v1043_v42  ;;  %v1165_v6 = vmul.f32 %v1125_v24, %v2849_v56  ;;  %v724_v42 = vrot.slane %v2711_v46, %v2609_v50 }
 0x253   : > { %1711 = vst.msk [vmem:[%s2729_s19 + $0x20] sm:$0xf] %vm1334_vm1, %v2002_v32  ;;  %v2003_v20 = vpack.c.bf16 %v917_v61, %v917_v61  ;;  %1487 = vrot.lane.b32.xlu1 %v1443_v1, %s2173_s20  ;;  %1481 = vrot.lane.b32.xlu0 %v1440_v29, %s2173_s20  ;;  %v1444_v35 = vmul.f32 %v2534_v34, %v1035_v45 }
 0x254   : > { %v1167_v60 = vmul.f32 %v1129_v22, %v917_v61 }
 0x255   : > { %1712 = vst.msk [vmem:[%s2729_s19 + $0x24] sm:$0xf] %vm1334_vm1, %v2003_v20  ;;  %v2884_v44 = vpop.f32.mrb[20].mxu0  ;;  %v1127_v43 = vpop.permute.xlu0 %1126 }
 0x256   : > { %v922_v11 = vpop.f32.mrb[21].mxu0  ;;  %v1133_v38 = vpop.permute.xlu1 %1132  ;;  %v1166_v52 = vmul.f32 %v1127_v43, %v913_v59 }
 0x257   : > { %v923_v48 = vadd.f32 %v922_v11, %v2716_v2  ;;  %1491 = vrot.lane.b32.xlu1 %v1445_v62, %s2173_s20  ;;  %v2888_v0 = vpop.f32.mrb[22].mxu0  ;;  %1489 = vrot.lane.b32.xlu0 %v1444_v35, %s2173_s20  ;;  %v2938_v11 = vrot.slane %v724_v42, %v2609_v50 }
 0x258   : > { %v926_v4 = vpop.f32.mrb[23].mxu0 }
 0x259   : > { %v2004_v34 = vpack.c.bf16 %v923_v48, %v923_v48  ;;  %v927_v15 = vadd.f32 %v926_v4, %v2716_v2  ;;  %v1164_v2 = vmul.f32 %v1123_v21, %v2837_v5  ;;  %v1131_v58 = vpop.permute.xlu0 %1130  ;;  %v871_v21 = vadd.f32 %v2743_v47, %v2938_v11 }
 0x25a   : > { %v1137_v9 = vpop.permute.xlu1 %1136  ;;  %v1168_v25 = vmul.f32 %v1131_v58, %v923_v48  ;;  %v881_v50 = vadd.f32 %v2772_v36, %v2938_v11  ;;  %v2962_v43 = vadd.f32 %v2781_v63, %v2938_v11 }
 0x25b   : > { %1713 = vst.msk [vmem:[%s2729_s19 + $0x28] sm:$0xf] %vm1334_vm1, %v2004_v34  ;;  %v2005_v12 = vpack.c.bf16 %v927_v15, %v927_v15  ;;  %1196 = vrot.lane.b32.xlu1 %v1161_v57, %s2173_s20  ;;  %1493 = vrot.lane.b32.xlu0 %v1446_v30, %s2173_s20  ;;  %v1171_v18 = vmul.f32 %v1137_v9, %v2734_v17 }
 0x25c   : > { %v1169_v28 = vmul.f32 %v1133_v38, %v927_v15  ;;  %v875_v57 = vadd.f32 %v2752_v54, %v2938_v11  ;;  %v1078_v34 = vmul.f32 %v2561_v39, %v871_v21  ;;  %v1080_v36 = vmul.f32 %v2571_v41, %v881_v50 }
 0x25d   : > { %1714 = vst.msk [vmem:[%s2729_s19 + $0x2c] sm:$0xf] %vm1334_vm1, %v2005_v12  ;;  %v1135_v29 = vpop.permute.xlu0 %1134 }
 0x25e   : > { %v1141_v5 = vpop.permute.xlu1 %1140  ;;  %v1170_v56 = vmul.f32 %v1135_v29, %v2721_v8  ;;  %v1079_v22 = vmul.f32 %v2568_v40, %v875_v57 }
 0x25f   : > { %1200 = vrot.lane.b32.xlu1 %v1163_v27, %s2173_s20  ;;  %1198 = vrot.lane.b32.xlu0 %v1162_v7, %s2173_s20  ;;  %v1173_v16 = vmul.f32 %v1141_v5, %v2760_v31 }
 0x261   : > { %v1139_v59 = vpop.permute.xlu0 %1138 }
 0x262   : > { %v1172_v10 = vmul.f32 %v1139_v59, %v2750_v51  ;;  %v1368_v32 = vpop.permute.xlu1 %1367 }
 0x263   : > { %1204 = vrot.lane.b32.xlu1 %v1165_v6, %s2173_s20  ;;  %1202 = vrot.lane.b32.xlu0 %v1164_v2, %s2173_s20  ;;  %v1415_v9 = vmul.f32 %v1368_v32, %v871_v21 }
 0x265   : > { %v1370_v17 = vpop.permute.xlu0 %1369 }
 0x266   : > { %v1372_v61 = vpop.permute.xlu1 %1371 }
 0x267   : > { %1208 = vrot.lane.b32.xlu1 %v1167_v60, %s2173_s20  ;;  %1206 = vrot.lane.b32.xlu0 %v1166_v52, %s2173_s20  ;;  %v1417_v39 = vmul.f32 %v1372_v61, %v881_v50  ;;  %v2969_v52 = vadd.f32 %v2832_v33, %v2938_v11 }
 0x269   : > { %v1374_v1 = vpop.permute.xlu0 %1373 }
 0x26a   : > { %v1376_v8 = vpop.permute.xlu1 %1375 }
 0x26b   : > { %1216 = vrot.lane.b32.xlu1 %v1171_v18, %s2173_s20  ;;  %1210 = vrot.lane.b32.xlu0 %v1168_v25, %s2173_s20  ;;  %v1418_v25 = vmul.f32 %v1374_v1, %v2962_v43  ;;  %v1416_v1 = vmul.f32 %v1370_v17, %v875_v57 }
 0x26d   : > { %v2921_v53 = vpop.permute.xlu0 %1377 }
 0x26e   : > { %v1380_v45 = vpop.permute.xlu1 %1379 }
 0x26f   : > { %1220 = vrot.lane.b32.xlu1 %v1173_v16, %s2173_s20  ;;  %1214 = vrot.lane.b32.xlu0 %v1170_v56, %s2173_s20  ;;  %v2977_v16 = vadd.f32 %v2800_v49, %v2938_v11  ;;  %v1421_v59 = vmul.f32 %v1380_v45, %v2969_v52  ;;  %v2990_v49 = vadd.f32 %v2884_v44, %v2938_v11 }
 0x270   : > { %v3003_v44 = vadd.f32 %v2862_v23, %v2938_v11 }
 0x271   : > { %v2923_v31 = vpop.permute.xlu0 %1381 }
 0x272   : > { %v2927_v24 = vpop.permute.xlu1 %1383 }
 0x273   : > { %1212 = vrot.lane.b32.xlu1 %v1169_v28, %s2173_s20  ;;  %1218 = vrot.lane.b32.xlu0 %v1172_v10, %s2173_s20  ;;  %v2982_v10 = vadd.f32 %v2839_v19, %v2938_v11  ;;  %v1419_v19 = vmul.f32 %v1376_v8, %v2977_v16 }
 0x275   : > { %v2925_v20 = vpop.permute.xlu0 %1385  ;;  %v1422_v57 = vmul.f32 %v2923_v31, %v2982_v10 }
 0x276   : > { %v2931_v62 = vpop.permute.xlu1 %1387 }
 0x279   : > { %v2929_v51 = vpop.permute.xlu0 %1389 }
 0x27a   : > { %v2940_v48 = vpop.permute.xlu1 %1391 }
 0x27d   : > { %v2935_v35 = vpop.permute.xlu0 %1393 }
 0x27e   : > { %v2948_v30 = vpop.permute.xlu1 %1395 }
 0x281   : > { %v2944_v4 = vpop.permute.xlu0 %1397 }
 0x2a5   : > { %v1191_v46 = vpop.permute.xlu0 %1190 }
 0x2a6   : > { %v1238_v15 = vadd.f32 %v1191_v46, %v1078_v34  ;;  %v2995_v34 = vadd.f32 %v2807_v14, %v2938_v11  ;;  %v1425_v14 = vmul.f32 %v2931_v62, %v2990_v49  ;;  %v1423_v62 = vmul.f32 %v2927_v24, %v3003_v44 }
 0x2a7   : > { %v1193_v7 = vpop.permute.xlu1 %1192 }
 0x2a8   : > { %v1254_v12 = vmul.f32 0.25, %v1238_v15  ;;  %v1239_v47 = vadd.f32 %v1193_v7, %v1079_v22 }
 0x2aa   : > { %v1962_v54 = vpack.c.bf16 %v1254_v12, %v1254_v12  ;;  %v1255_v27 = vmul.f32 0.25, %v1239_v47  ;;  %v3009_v12 = vadd.f32 %v2888_v0, %v2938_v11  ;;  %v1420_v47 = vmul.f32 %v2921_v53, %v2995_v34 }
 0x2ab   : > { %v3019_v0 = vadd.f32 %v2718_v3, %v2938_v11  ;;  %v3031_v3 = vadd.f32 %v2723_v13, %v2938_v11 }
 0x2ac   : > { %1335 = vst.msk [vmem:[%s2958_s11] sm:$0xf] %vm1334_vm1, %v1962_v54  ;;  %v1468_v40 = vpop.permute.xlu1 %1467  ;;  %v1963_v38 = vpack.c.bf16 %v1255_v27, %v1255_v27 }
 0x2ad   : > { %v1513_v2 = vadd.f32 %v1468_v40, %v1417_v39  ;;  %v1195_v6 = vpop.permute.xlu0 %1194  ;;  %v3023_v40 = vadd.f32 %v2867_v37, %v2938_v11  ;;  %v1427_v37 = vmul.f32 %v2940_v48, %v3019_v0  ;;  %v1428_v13 = vmul.f32 %v2935_v35, %v3031_v3 }
 0x2ae   : > { %v1240_v58 = vadd.f32 %v1195_v6, %v1080_v36  ;;  %1336 = vst.msk [vmem:[%s2958_s11 + $0x4] sm:$0xf] %vm1334_vm1, %v1963_v38  ;;  %v1426_v38 = vmul.f32 %v2929_v51, %v3009_v12  ;;  %v3049_v48 = vadd.f32 %v2754_v55, %v2938_v11 }
 0x2af   : > { %v1980_v60 = vpack.c.bf16 %v1513_v2, %v1513_v2 }
 0x2b0   : > { %v1256_v63 = vmul.f32 0.25, %v1240_v58  ;;  %v1464_v18 = vpop.permute.xlu1 %1463  ;;  %v1430_v35 = vmul.f32 %v2944_v4, %v3049_v48 }
 0x2b1   : > { %v1511_v29 = vadd.f32 %v1464_v18, %v1415_v9  ;;  %1579 = vrot.lane.b32.xlu0 %v1980_v60, %s2173_s20  ;;  %v1470_v41 = vpop.permute.xlu0 %1469  ;;  %v3037_v60 = vadd.f32 %v2745_v26, %v2938_v11  ;;  %v1424_v9 = vmul.f32 %v2925_v20, %v3023_v40 }
 0x2b2   : > { %v1964_v5 = vpack.c.bf16 %v1256_v63, %v1256_v63  ;;  %v1514_v56 = vadd.f32 %v1470_v41, %v1418_v25 }
 0x2b3   : > { %v1978_v33 = vpack.c.bf16 %v1511_v29, %v1511_v29  ;;  %v1429_v26 = vmul.f32 %v2948_v30, %v3037_v60 }
 0x2b4   : > { %1337 = vst.msk [vmem:[%s2958_s11 + $0x8] sm:$0xf] %vm1334_vm1, %v1964_v5  ;;  %v1981_v28 = vpack.c.bf16 %v1514_v56, %v1514_v56  ;;  %v1476_v32 = vpop.permute.xlu1 %1475 }
 0x2b5   : > { %v1517_v61 = vadd.f32 %v1476_v32, %v1421_v59  ;;  %1575 = vrot.lane.b32.xlu0 %v1978_v33, %s2173_s20  ;;  %v1466_v42 = vpop.permute.xlu0 %1465  ;;  %v2151_v32 = vld [vmem:[%s2551_s23 + $0x18] sm:$0xff] }
 0x2b6   : > { %v1512_v21 = vadd.f32 %v1466_v42, %v1416_v1  ;;  %1581 = vrot.lane.b32.xlu1 %v1981_v28, %s2173_s20  ;;  %v1081_v55 = vmul.f32 %v2151_v32, %v2962_v43 }
 0x2b7   : > { %v1984_v45 = vpack.c.bf16 %v1517_v61, %v1517_v61 }
 0x2b8   : > { %v1979_v46 = vpack.c.bf16 %v1512_v21, %v1512_v21  ;;  %v1472_v17 = vpop.permute.xlu1 %1471 }
 0x2b9   : > { %v1515_v15 = vadd.f32 %v1472_v17, %v1419_v19  ;;  %1587 = vrot.lane.b32.xlu0 %v1984_v45, %s2173_s20  ;;  %v1478_v50 = vpop.permute.xlu0 %1477  ;;  %v2152_v19 = vld [vmem:[%s2551_s23 + $0x28] sm:$0xff] }
 0x2ba   : > { %v1518_v22 = vadd.f32 %v1478_v50, %v1422_v57  ;;  %1577 = vrot.lane.b32.xlu1 %v1979_v46, %s2173_s20  ;;  %v1083_v4 = vmul.f32 %v2152_v19, %v2995_v34  ;;  %v2153_v46 = vld [vmem:[%s2551_s23 + $0x20] sm:$0xff] }
 0x2bb   : > { %v1982_v8 = vpack.c.bf16 %v1515_v15, %v1515_v15  ;;  %v1082_v17 = vmul.f32 %v2153_v46, %v2977_v16 }
 0x2bc   : > { %v1985_v31 = vpack.c.bf16 %v1518_v22, %v1518_v22  ;;  %v1484_v7 = vpop.permute.xlu1 %1483 }
 0x2bd   : > { %v1521_v54 = vadd.f32 %v1484_v7, %v1425_v14  ;;  %1583 = vrot.lane.b32.xlu0 %v1982_v8, %s2173_s20  ;;  %v1474_v27 = vpop.permute.xlu0 %1473  ;;  %v2155_v7 = vld [vmem:[%s2551_s23 + $0x30] sm:$0xff] }
 0x2be   : > { %v1516_v39 = vadd.f32 %v1474_v27, %v1420_v47  ;;  %1589 = vrot.lane.b32.xlu1 %v1985_v31, %s2173_s20  ;;  %v2154_v31 = vld [vmem:[%s2551_s23 + $0x38] sm:$0xff]  ;;  %v1084_v16 = vmul.f32 %v2155_v7, %v2969_v52  ;;  %v2157_v52 = vld [vmem:[%s2551_s23 + $0x40] sm:$0xff] }
 0x2bf   : > { %v1988_v23 = vpack.c.bf16 %v1521_v54, %v1521_v54  ;;  %v1085_v34 = vmul.f32 %v2154_v31, %v2982_v10 }
 0x2c0   : > { %v1983_v53 = vpack.c.bf16 %v1516_v39, %v1516_v39  ;;  %v1480_v36 = vpop.permute.xlu1 %1479 }
 0x2c1   : > { %v1519_v2 = vadd.f32 %v1480_v36, %v1423_v62  ;;  %1595 = vrot.lane.b32.xlu0 %v1988_v23, %s2173_s20  ;;  %v1486_v6 = vpop.permute.xlu0 %1485 }
 0x2c2   : > { %v1522_v58 = vadd.f32 %v1486_v6, %v1426_v38  ;;  %1585 = vrot.lane.b32.xlu1 %v1983_v53, %s2173_s20  ;;  %v2156_v38 = vld [vmem:[%s2551_s23 + $0x48] sm:$0xff] }
 0x2c3   : > { %v1986_v24 = vpack.c.bf16 %v1519_v2, %v1519_v2  ;;  %v1087_v10 = vmul.f32 %v2156_v38, %v3023_v40  ;;  %v1086_v2 = vmul.f32 %v2157_v52, %v3003_v44  ;;  %v2159_v44 = vld [vmem:[%s2551_s23 + $0x50] sm:$0xff] }
 0x2c4   : > { %v1989_v51 = vpack.c.bf16 %v1522_v58, %v1522_v58 }
 0x2c5   : > { %v1488_v63 = vpop.permute.xlu1 %1487  ;;  %1591 = vrot.lane.b32.xlu0 %v1986_v24, %s2173_s20  ;;  %v1482_v18 = vpop.permute.xlu0 %1481 }
 0x2c6   : > { %v1523_v25 = vadd.f32 %v1488_v63, %v1427_v37  ;;  %v1520_v29 = vadd.f32 %v1482_v18, %v1424_v9  ;;  %1597 = vrot.lane.b32.xlu1 %v1989_v51, %s2173_s20 }
 0x2c8   : > { %v1990_v20 = vpack.c.bf16 %v1523_v25, %v1523_v25  ;;  %v1987_v41 = vpack.c.bf16 %v1520_v29, %v1520_v29  ;;  %v2158_v25 = vld [vmem:[%s2551_s23 + $0x68] sm:$0xff]  ;;  %v1088_v29 = vmul.f32 %v2159_v44, %v2990_v49  ;;  %v2161_v49 = vld [vmem:[%s2551_s23 + $0x60] sm:$0xff] }
 0x2c9   : > { %v1492_v5 = vpop.permute.xlu1 %1491  ;;  %v1490_v56 = vpop.permute.xlu0 %1489  ;;  %v1091_v40 = vmul.f32 %v2158_v25, %v3031_v3 }
 0x2ca   : > { %v1525_v33 = vadd.f32 %v1492_v5, %v1429_v26  ;;  %v1524_v59 = vadd.f32 %v1490_v56, %v1428_v13  ;;  %1599 = vrot.lane.b32.xlu0 %v1990_v20, %s2173_s20  ;;  %1593 = vrot.lane.b32.xlu1 %v1987_v41, %s2173_s20 }
 0x2cc   : > { %v1992_v30 = vpack.c.bf16 %v1525_v33, %v1525_v33  ;;  %v1991_v28 = vpack.c.bf16 %v1524_v59, %v1524_v59 }
 0x2cd   : > { %v1197_v11 = vpop.permute.xlu1 %1196  ;;  %v1494_v1 = vpop.permute.xlu0 %1493 }
 0x2ce   : > { %v1241_v61 = vadd.f32 %v1197_v11, %v1081_v55  ;;  %v1526_v42 = vadd.f32 %v1494_v1, %v1430_v35  ;;  %1603 = vrot.lane.b32.xlu0 %v1992_v30, %s2173_s20  ;;  %1601 = vrot.lane.b32.xlu1 %v1991_v28, %s2173_s20  ;;  %v2160_v35 = vld [vmem:[%s2551_s23 + $0x78] sm:$0xff]  ;;  %v1090_v30 = vmul.f32 %v2161_v49, %v3019_v0  ;;  %v2163_v0 = vld [vmem:[%s2551_s23 + $0x70] sm:$0xff] }
 0x2cf   : > { %v1093_v3 = vmul.f32 %v2160_v35, %v3049_v48  ;;  %v1092_v19 = vmul.f32 %v2163_v0, %v3037_v60 }
 0x2d0   : > { %v1257_v21 = vmul.f32 0.25, %v1241_v61  ;;  %v1993_v45 = vpack.c.bf16 %v1526_v42, %v1526_v42 }
 0x2d1   : > { %v1201_v43 = vpop.permute.xlu1 %1200  ;;  %v1199_v57 = vpop.permute.xlu0 %1198 }
 0x2d2   : > { %v1965_v15 = vpack.c.bf16 %v1257_v21, %v1257_v21  ;;  %v1243_v50 = vadd.f32 %v1201_v43, %v1083_v4  ;;  %v1242_v22 = vadd.f32 %v1199_v57, %v1082_v17  ;;  %1605 = vrot.lane.b32.xlu1 %v1993_v45, %s2173_s20  ;;  %v2162_v45 = vld [vmem:[%s2551_s23 + $0x58] sm:$0xff] }
 0x2d3   : > { %v1089_v48 = vmul.f32 %v2162_v45, %v3009_v12 }
 0x2d4   : > { %1338 = vst.msk [vmem:[%s2958_s11 + $0xc] sm:$0xf] %vm1334_vm1, %v1965_v15  ;;  %v1259_v8 = vmul.f32 0.25, %v1243_v50  ;;  %v1258_v14 = vmul.f32 0.25, %v1242_v22 }
 0x2d5   : > { %v1205_v47 = vpop.permute.xlu1 %1204  ;;  %v1203_v54 = vpop.permute.xlu0 %1202 }
 0x2d6   : > { %v1967_v27 = vpack.c.bf16 %v1259_v8, %v1259_v8  ;;  %v1966_v39 = vpack.c.bf16 %v1258_v14, %v1258_v14  ;;  %v1245_v23 = vadd.f32 %v1205_v47, %v1085_v34  ;;  %v1244_v62 = vadd.f32 %v1203_v54, %v1084_v16 }
 0x2d8   : > { %1340 = vst.msk [vmem:[%s2958_s11 + $0x14] sm:$0xf] %vm1334_vm1, %v1967_v27  ;;  %1339 = vst.msk [vmem:[%s2958_s11 + $0x10] sm:$0xf] %vm1334_vm1, %v1966_v39  ;;  %v1261_v53 = vmul.f32 0.25, %v1245_v23  ;;  %v1260_v36 = vmul.f32 0.25, %v1244_v62 }
 0x2d9   : > { %v1209_v6 = vpop.permute.xlu1 %1208  ;;  %v1207_v58 = vpop.permute.xlu0 %1206 }
 0x2da   : > { %v1969_v24 = vpack.c.bf16 %v1261_v53, %v1261_v53  ;;  %v1968_v37 = vpack.c.bf16 %v1260_v36, %v1260_v36  ;;  %v1247_v51 = vadd.f32 %v1209_v6, %v1087_v10  ;;  %v1246_v9 = vadd.f32 %v1207_v58, %v1086_v2 }
 0x2dc   : > { %1342 = vst.msk [vmem:[%s2958_s11 + $0x1c] sm:$0xf] %vm1334_vm1, %v1969_v24  ;;  %1341 = vst.msk [vmem:[%s2958_s11 + $0x18] sm:$0xf] %vm1334_vm1, %v1968_v37  ;;  %v1263_v63 = vmul.f32 0.25, %v1247_v51  ;;  %v1262_v18 = vmul.f32 0.25, %v1246_v9 }
 0x2dd   : > { %v1217_v13 = vpop.permute.xlu1 %1216  ;;  %v1211_v26 = vpop.permute.xlu0 %1210 }
 0x2de   : > { %v1971_v20 = vpack.c.bf16 %v1263_v63, %v1263_v63  ;;  %v1970_v41 = vpack.c.bf16 %v1262_v18, %v1262_v18  ;;  %v1251_v5 = vadd.f32 %v1217_v13, %v1091_v40  ;;  %v1248_v56 = vadd.f32 %v1211_v26, %v1088_v29 }
 0x2e0   : > { %1344 = vst.msk [vmem:[%s2958_s11 + $0x24] sm:$0xf] %vm1334_vm1, %v1971_v20  ;;  %1343 = vst.msk [vmem:[%s2958_s11 + $0x20] sm:$0xf] %vm1334_vm1, %v1970_v41  ;;  %v1267_v33 = vmul.f32 0.25, %v1251_v5  ;;  %v1264_v59 = vmul.f32 0.25, %v1248_v56 }
 0x2e1   : > { %v1221_v28 = vpop.permute.xlu1 %1220  ;;  %v1215_v32 = vpop.permute.xlu0 %1214 }
 0x2e2   : > { %v1975_v55 = vpack.c.bf16 %v1267_v33, %v1267_v33  ;;  %v1972_v11 = vpack.c.bf16 %v1264_v59, %v1264_v59  ;;  %v1253_v1 = vadd.f32 %v1221_v28, %v1093_v3  ;;  %v1250_v61 = vadd.f32 %v1215_v32, %v1090_v30 }
 0x2e4   : > { %1348 = vst.msk [vmem:[%s2958_s11 + $0x34] sm:$0xf] %vm1334_vm1, %v1975_v55  ;;  %1345 = vst.msk [vmem:[%s2958_s11 + $0x28] sm:$0xf] %vm1334_vm1, %v1972_v11  ;;  %v1269_v42 = vmul.f32 0.25, %v1253_v1  ;;  %v1266_v21 = vmul.f32 0.25, %v1250_v61 }
 0x2e5   : > { %v1213_v4 = vpop.permute.xlu1 %1212  ;;  %v1219_v46 = vpop.permute.xlu0 %1218 }
 0x2e6   : > { %v1977_v17 = vpack.c.bf16 %v1269_v42, %v1269_v42  ;;  %v1974_v43 = vpack.c.bf16 %v1266_v21, %v1266_v21  ;;  %v1249_v57 = vadd.f32 %v1213_v4, %v1089_v48  ;;  %v1252_v15 = vadd.f32 %v1219_v46, %v1092_v19 }
 0x2e8   : > { %1350 = vst.msk [vmem:[%s2958_s11 + $0x3c] sm:$0xf] %vm1334_vm1, %v1977_v17  ;;  %1347 = vst.msk [vmem:[%s2958_s11 + $0x30] sm:$0xf] %vm1334_vm1, %v1974_v43  ;;  %v1265_v50 = vmul.f32 0.25, %v1249_v57  ;;  %v1268_v22 = vmul.f32 0.25, %v1252_v15 }
 0x2ea   : > { %v1973_v8 = vpack.c.bf16 %v1265_v50, %v1265_v50  ;;  %v1976_v14 = vpack.c.bf16 %v1268_v22, %v1268_v22 }
 0x2ec   : > { %1346 = vst.msk [vmem:[%s2958_s11 + $0x2c] sm:$0xf] %vm1334_vm1, %v1973_v8  ;;  %1349 = vst.msk [vmem:[%s2958_s11 + $0x38] sm:$0xf] %vm1334_vm1, %v1976_v14 }
 0x323   : > { %v1580_v12 = vpop.permute.xlu0 %1579 }
 0x324   : > { %1625 = vst.msk [vmem:[%s3114_s24 + $0x8] sm:$0xf] %vm1334_vm1, %v1580_v12 }
 0x327   : > { %v1576_v60 = vpop.permute.xlu0 %1575 }
 0x328   : > { %1623 = vst.msk [vmem:[%s3114_s24] sm:$0xf] %vm1334_vm1, %v1576_v60  ;;  %v1582_v31 = vpop.permute.xlu1 %1581 }
 0x329   : > { %1626 = vst.msk [vmem:[%s3114_s24 + $0xc] sm:$0xf] %vm1334_vm1, %v1582_v31 }
 0x32b   : > { %v1588_v34 = vpop.permute.xlu0 %1587 }
 0x32c   : > { %1629 = vst.msk [vmem:[%s3114_s24 + $0x18] sm:$0xf] %vm1334_vm1, %v1588_v34  ;;  %v1578_v7 = vpop.permute.xlu1 %1577 }
 0x32d   : > { %1624 = vst.msk [vmem:[%s3114_s24 + $0x4] sm:$0xf] %vm1334_vm1, %v1578_v7 }
 0x32f   : > { %v1584_v16 = vpop.permute.xlu0 %1583 }
 0x330   : > { %1627 = vst.msk [vmem:[%s3114_s24 + $0x10] sm:$0xf] %vm1334_vm1, %v1584_v16  ;;  %v1590_v47 = vpop.permute.xlu1 %1589 }
 0x331   : > { %1630 = vst.msk [vmem:[%s3114_s24 + $0x1c] sm:$0xf] %vm1334_vm1, %v1590_v47 }
 0x333   : > { %v1596_v54 = vpop.permute.xlu0 %1595 }
 0x334   : > { %1633 = vst.msk [vmem:[%s3114_s24 + $0x28] sm:$0xf] %vm1334_vm1, %v1596_v54  ;;  %v1586_v27 = vpop.permute.xlu1 %1585 }
 0x335   : > { %1628 = vst.msk [vmem:[%s3114_s24 + $0x14] sm:$0xf] %vm1334_vm1, %v1586_v27 }
 0x337   : > { %v1592_v39 = vpop.permute.xlu0 %1591 }
 0x338   : > { %1631 = vst.msk [vmem:[%s3114_s24 + $0x20] sm:$0xf] %vm1334_vm1, %v1592_v39  ;;  %v1598_v23 = vpop.permute.xlu1 %1597 }
 0x339   : > { %1634 = vst.msk [vmem:[%s3114_s24 + $0x2c] sm:$0xf] %vm1334_vm1, %v1598_v23 }
 0x33c   : > { %v1594_v62 = vpop.permute.xlu1 %1593  ;;  %v1600_v53 = vpop.permute.xlu0 %1599 }
 0x33d   : > { %1632 = vst.msk [vmem:[%s3114_s24 + $0x24] sm:$0xf] %vm1334_vm1, %v1594_v62  ;;  %1635 = vst.msk [vmem:[%s3114_s24 + $0x30] sm:$0xf] %vm1334_vm1, %v1600_v53 }
 0x340   : > { %v1602_v36 = vpop.permute.xlu1 %1601  ;;  %v1604_v38 = vpop.permute.xlu0 %1603 }
 0x341   : > { %1636 = vst.msk [vmem:[%s3114_s24 + $0x34] sm:$0xf] %vm1334_vm1, %v1602_v36  ;;  %1637 = vst.msk [vmem:[%s3114_s24 + $0x38] sm:$0xf] %vm1334_vm1, %v1604_v38 }
 0x344   : > { %v1606_v10 = vpop.permute.xlu1 %1605 }
 0x345   : > { %1638 = vst.msk [vmem:[%s3114_s24 + $0x3c] sm:$0xf] %vm1334_vm1, %v1606_v10 }
 0x346 PF: > { %s20_s30 = sadd.s32 1, %s2170_s30  }
 0x347   : > { %p17_p4 = scmp.ge.s32.totalorder %s20_s30, 4  }
 0x349   :  { %19 = sbr.rel (!%p17_p4) target bundleno = 1 (0x1), region = 108 }

</bundles_post_ra>
